<compile_context>
chip_gen: v5e
topology: v5e:2x2
jax: 0.10.0
libtpu: 0.0.40
codegen_flags: <defaults>
</compile_context>

<pallas_src>
import functools
import math

import jax
import jax.numpy as jnp
from jax import lax
from jax.experimental import pallas as pl
from jax.experimental.pallas import tpu as pltpu


CFG = dict(vocab_size=50, max_pos=16, type_vocab=2, hidden=32, heads=4,
           layers=2, intermediate=64, num_labels=2)


# ----------------------------- fused Pallas kernel -----------------------------

def _layer_norm(x, g, b, eps):
    mean = jnp.mean(x, axis=-1, keepdims=True)
    var = jnp.mean(jnp.square(x - mean), axis=-1, keepdims=True)
    return (x - mean) * lax.rsqrt(var + eps) * g + b


def _fused_bert_kernel(
    emb_ref, mask_ref, emb_g_ref, emb_b_ref,
    wqkv_ref, bqkv_ref, wo_ref, bo_ref, ln1_g_ref, ln1_b_ref,
    w1_ref, b1_ref, w2_ref, b2_ref, ln2_g_ref, ln2_b_ref,
    pool_w_ref, pool_b_ref, cls_w_ref, cls_b_ref,
    out_ref, x_scr,
    *, B, S, NH, DH, eps):
    layer = pl.program_id(0)
    H = NH * DH
    scale = 1.0 / math.sqrt(DH)

    # ---- embedding LayerNorm: first grid step only ----
    @pl.when(layer == 0)
    def _():
        x_scr[...] = _layer_norm(emb_ref[...], emb_g_ref[...], emb_b_ref[...],
                                 eps).astype(x_scr.dtype)

    x = x_scr[...]                                           # (B*S, H) residual stream

    # ---- fused QKV projection: single (B*S, H) @ (H, 3H) matmul ----
    qkv = jnp.dot(x, wqkv_ref[0],
                  preferred_element_type=jnp.float32) + bqkv_ref[0]   # (B*S, 3H)
    q = qkv[:, 0 * H:1 * H]
    k = qkv[:, 1 * H:2 * H]
    v = qkv[:, 2 * H:3 * H]

    mask = mask_ref[...]                                     # (B, S) additive bias
    wo = wo_ref[0]                                           # (H, H)

    # ---- all (batch, head) attention blocks inside this one grid step;
    #      the output projection is folded per head, so no lane-dim concat ----
    rows = []
    for b in range(B):
        qb = q[b * S:(b + 1) * S, :]                         # (S, H)
        kb = k[b * S:(b + 1) * S, :]
        vb = v[b * S:(b + 1) * S, :]
        mb = mask[b:b + 1, :]                                # (1, S), broadcast over rows
        acc = jnp.zeros((S, H), jnp.float32)
        for h in range(NH):
            qh = qb[:, h * DH:(h + 1) * DH]                  # (S, DH)
            kh = kb[:, h * DH:(h + 1) * DH]
            vh = vb[:, h * DH:(h + 1) * DH]
            # q @ k^T via contracting dims — no transpose materialized
            s = lax.dot_general(qh, kh, (((1,), (1,)), ((), ())),
                                preferred_element_type=jnp.float32) * scale + mb
            s = s - jnp.max(s, axis=-1, keepdims=True)
            p = jnp.exp(s)
            p = p * pl.reciprocal(jnp.sum(p, axis=-1, keepdims=True), approx=True)
            oh = jnp.dot(p, vh, preferred_element_type=jnp.float32)          # (S, DH)
            acc = acc + jnp.dot(oh, wo[h * DH:(h + 1) * DH, :],
                                preferred_element_type=jnp.float32)          # (S, H)
        rows.append(acc)
    attn_out = jnp.concatenate(rows, axis=0) + bo_ref[0]                     # (B*S, H)

    # ---- residual + LN1 ----
    x = _layer_norm(attn_out + x, ln1_g_ref[0], ln1_b_ref[0], eps)

    # ---- FFN (intermediate + output dense) ----
    # TODO(synk): HF BERT uses exact erf-GELU; tanh approximation kept for Mosaic-safe lowering.
    hid = jax.nn.gelu(jnp.dot(x, w1_ref[0],
                              preferred_element_type=jnp.float32) + b1_ref[0])
    ffn_out = jnp.dot(hid, w2_ref[0],
                      preferred_element_type=jnp.float32) + b2_ref[0]

    # ---- residual + LN2; carry to next layer via VMEM scratch ----
    x = _layer_norm(ffn_out + x, ln2_g_ref[0], ln2_b_ref[0], eps)
    x_scr[...] = x.astype(x_scr.dtype)

    # ---- pooler + classifier fused into the last grid step ----
    @pl.when(layer == pl.num_programs(0) - 1)
    def _():
        cls_rows = jnp.concatenate(
            [x[b * S:b * S + 1, :] for b in range(B)], axis=0)               # (B, H)
        pooled = jnp.tanh(jnp.dot(cls_rows, pool_w_ref[...],
                                  preferred_element_type=jnp.float32) + pool_b_ref[...])
        # nn.Dropout(0.3): identity at inference (eval mode)
        logits = jnp.dot(pooled, cls_w_ref[...],
                         preferred_element_type=jnp.float32) + cls_b_ref[...]
        out_ref[...] = logits.astype(out_ref.dtype)


# ----------------------------- wrapper -----------------------------

def bert_sentiment_classifier(params, input_ids, attention_mask, cfg):
    B, S = input_ids.shape
    H, NH, L = cfg["hidden"], cfg["heads"], cfg["layers"]
    I, NL = cfg["intermediate"], cfg["num_labels"]
    DH = H // NH

    # --- embeddings: word + position + token_type(0) gathers stay as JAX glue ---
    emb = (params["word_emb"][input_ids]
           + params["pos_emb"][:S][None, :, :]
           + params["type_emb"][0][None, None, :]).reshape(B * S, H).astype(jnp.float32)

    # extended attention mask built once as (B, S): (1 - mask) * -10000
    mask_bias = (1.0 - attention_mask.astype(jnp.float32)) * -10000.0        # (B, S)

    st = params["stacked"]    # per-layer weights stacked along a leading layer axis

    kernel = functools.partial(_fused_bert_kernel, B=B, S=S, NH=NH, DH=DH, eps=1e-12)

    def full2d(shape):
        return pl.BlockSpec(shape, lambda l: (0, 0))

    def per_layer(shape):
        return pl.BlockSpec((1,) + shape, lambda l: (l, 0, 0))

    return pl.pallas_call(
        kernel,
        out_shape=jax.ShapeDtypeStruct((B, NL), jnp.float32),
        grid=(L,),
        in_specs=[
            full2d((B * S, H)),           # emb
            full2d((B, S)),               # mask_bias
            full2d((1, H)),               # emb_ln_g
            full2d((1, H)),               # emb_ln_b
            per_layer((H, 3 * H)),        # wqkv
            per_layer((1, 3 * H)),        # bqkv
            per_layer((H, H)),            # wo
            per_layer((1, H)),            # bo
            per_layer((1, H)),            # ln1_g
            per_layer((1, H)),            # ln1_b
            per_layer((H, I)),            # w1
            per_layer((1, I)),            # b1
            per_layer((I, H)),            # w2
            per_layer((1, H)),            # b2
            per_layer((1, H)),            # ln2_g
            per_layer((1, H)),            # ln2_b
            full2d((H, H)),               # pool_w
            full2d((1, H)),               # pool_b
            full2d((H, NL)),              # cls_w
            full2d((1, NL)),              # cls_b
        ],
        out_specs=pl.BlockSpec((B, NL), lambda l: (0, 0)),
        scratch_shapes=[pltpu.VMEM((B * S, H), jnp.float32)],   # residual stream
        compiler_params=pltpu.CompilerParams(
            dimension_semantics=("arbitrary",)),  # layer axis carries the residual
    )(
        emb, mask_bias,
        params["emb_ln_g"].reshape(1, H), params["emb_ln_b"].reshape(1, H),
        st["wqkv"], st["bqkv"], st["wo"], st["bo"],
        st["ln1_g"], st["ln1_b"], st["w1"], st["b1"], st["w2"], st["b2"],
        st["ln2_g"], st["ln2_b"],
        params["pool_w"], params["pool_b"].reshape(1, H),
        params["cls_w"], params["cls_b"].reshape(1, NL),
    )


# ----------------------------- synthetic params -----------------------------

def init_params(key, cfg):
    H, I, L = cfg["hidden"], cfg["intermediate"], cfg["layers"]

    def dense(k, fan_in, fan_out):
        return jax.random.normal(k, (fan_in, fan_out), jnp.float32) * 0.02

    keys = iter(jax.random.split(key, 64))
    p = {
        "word_emb": dense(next(keys), cfg["vocab_size"], H),
        "pos_emb": dense(next(keys), cfg["max_pos"], H),
        "type_emb": dense(next(keys), cfg["type_vocab"], H),
        "emb_ln_g": jnp.ones((H,), jnp.float32),
        "emb_ln_b": jnp.zeros((H,), jnp.float32),
        "pool_w": dense(next(keys), H, H),
        "pool_b": jnp.zeros((H,), jnp.float32),
        "cls_w": dense(next(keys), H, cfg["num_labels"]),
        "cls_b": jnp.zeros((cfg["num_labels"],), jnp.float32),
    }
    layers = []
    for _ in range(L):
        wq = dense(next(keys), H, H)
        wk = dense(next(keys), H, H)
        wv = dense(next(keys), H, H)
        layers.append(dict(
            wqkv=jnp.concatenate([wq, wk, wv], axis=1),               # (H, 3H) fused
            bqkv=jnp.zeros((1, 3 * H), jnp.float32),
            wo=dense(next(keys), H, H), bo=jnp.zeros((1, H), jnp.float32),
            ln1_g=jnp.ones((1, H), jnp.float32), ln1_b=jnp.zeros((1, H), jnp.float32),
            w1=dense(next(keys), H, I), b1=jnp.zeros((1, I), jnp.float32),
            w2=dense(next(keys), I, H), b2=jnp.zeros((1, H), jnp.float32),
            ln2_g=jnp.ones((1, H), jnp.float32), ln2_b=jnp.zeros((1, H), jnp.float32),
        ))
    p["stacked"] = {k: jnp.stack([lyr[k] for lyr in layers], axis=0)
                    for k in layers[0]}
    return p


if __name__ == "__main__":
    cfg = CFG
    key = jax.random.PRNGKey(0)
    pkey, ikey = jax.random.split(key)
    params = init_params(pkey, cfg)

    B, S = 2, 8
    input_ids = jax.random.randint(ikey, (B, S), 0, cfg["vocab_size"], dtype=jnp.int32)
    attention_mask = jnp.array([[1, 1, 1, 1, 1, 1, 1, 1],
                                [1, 1, 1, 1, 1, 1, 0, 0]], dtype=jnp.int32)

    logits = bert_sentiment_classifier(params, input_ids, attention_mask, cfg)
    logits = jax.block_until_ready(logits)
    assert logits.shape == (B, cfg["num_labels"])
    assert bool(jnp.all(jnp.isfinite(logits)))
    print("KERNEL_OK")
</pallas_src>

<mosaic_0001>
module attributes {stable_mosaic.version = 11 : i64} {
  func.func @_fused_bert_kernel(%arg0: i32, %arg1: memref<16x32xf32, #tpu.memory_space<vmem>>, %arg2: memref<2x8xf32, #tpu.memory_space<vmem>>, %arg3: memref<1x32xf32, #tpu.memory_space<vmem>>, %arg4: memref<1x32xf32, #tpu.memory_space<vmem>>, %arg5: memref<1x32x96xf32, #tpu.memory_space<vmem>>, %arg6: memref<1x1x96xf32, #tpu.memory_space<vmem>>, %arg7: memref<1x32x32xf32, #tpu.memory_space<vmem>>, %arg8: memref<1x1x32xf32, #tpu.memory_space<vmem>>, %arg9: memref<1x1x32xf32, #tpu.memory_space<vmem>>, %arg10: memref<1x1x32xf32, #tpu.memory_space<vmem>>, %arg11: memref<1x32x64xf32, #tpu.memory_space<vmem>>, %arg12: memref<1x1x64xf32, #tpu.memory_space<vmem>>, %arg13: memref<1x64x32xf32, #tpu.memory_space<vmem>>, %arg14: memref<1x1x32xf32, #tpu.memory_space<vmem>>, %arg15: memref<1x1x32xf32, #tpu.memory_space<vmem>>, %arg16: memref<1x1x32xf32, #tpu.memory_space<vmem>>, %arg17: memref<32x32xf32, #tpu.memory_space<vmem>>, %arg18: memref<1x32xf32, #tpu.memory_space<vmem>>, %arg19: memref<32x2xf32, #tpu.memory_space<vmem>>, %arg20: memref<1x2xf32, #tpu.memory_space<vmem>>, %arg21: memref<2x2xf32, #tpu.memory_space<vmem>>, %arg22: memref<16x32xf32, #tpu.memory_space<vmem>>) attributes {dimension_semantics = [#tpu.dimension_semantics<arbitrary>], iteration_bounds = array<i64: 2>, scalar_prefetch = 0 : i64, scratch_operands = 1 : i64, tpu.core_type = #tpu.core_type<tc>, window_params = [{pipeline_mode = #tpu.pipeline_mode<synchronous>, transform_indices = @transform_0, window_bounds = array<i64: 16, 32>}, {pipeline_mode = #tpu.pipeline_mode<synchronous>, transform_indices = @transform_1, window_bounds = array<i64: 2, 8>}, {pipeline_mode = #tpu.pipeline_mode<synchronous>, transform_indices = @transform_2, window_bounds = array<i64: 1, 32>}, {pipeline_mode = #tpu.pipeline_mode<synchronous>, transform_indices = @transform_3, window_bounds = array<i64: 1, 32>}, {transform_indices = @transform_4, window_bounds = array<i64: 1, 32, 96>}, {transform_indices = @transform_5, window_bounds = array<i64: 1, 1, 96>}, {transform_indices = @transform_6, window_bounds = array<i64: 1, 32, 32>}, {transform_indices = @transform_7, window_bounds = array<i64: 1, 1, 32>}, {transform_indices = @transform_8, window_bounds = array<i64: 1, 1, 32>}, {transform_indices = @transform_9, window_bounds = array<i64: 1, 1, 32>}, {transform_indices = @transform_10, window_bounds = array<i64: 1, 32, 64>}, {transform_indices = @transform_11, window_bounds = array<i64: 1, 1, 64>}, {transform_indices = @transform_12, window_bounds = array<i64: 1, 64, 32>}, {transform_indices = @transform_13, window_bounds = array<i64: 1, 1, 32>}, {transform_indices = @transform_14, window_bounds = array<i64: 1, 1, 32>}, {transform_indices = @transform_15, window_bounds = array<i64: 1, 1, 32>}, {pipeline_mode = #tpu.pipeline_mode<synchronous>, transform_indices = @transform_16, window_bounds = array<i64: 32, 32>}, {pipeline_mode = #tpu.pipeline_mode<synchronous>, transform_indices = @transform_17, window_bounds = array<i64: 1, 32>}, {pipeline_mode = #tpu.pipeline_mode<synchronous>, transform_indices = @transform_18, window_bounds = array<i64: 32, 2>}, {pipeline_mode = #tpu.pipeline_mode<synchronous>, transform_indices = @transform_19, window_bounds = array<i64: 1, 2>}, {pipeline_mode = #tpu.pipeline_mode<synchronous>, transform_indices = @transform_20, window_bounds = array<i64: 2, 2>}]} {
    %c0_i32 = arith.constant 0 : i32
    %0 = arith.cmpi eq, %arg0, %c0_i32 : i32
    %1 = arith.extui %0 : i1 to i32
    %c0_i32_0 = arith.constant 0 : i32
    %2 = arith.cmpi ne, %1, %c0_i32_0 : i32
    scf.if %2 {
      %c0_109 = arith.constant 0 : index
      %c0_110 = arith.constant 0 : index
      %293 = vector.load %arg1[%c0_109, %c0_110] : memref<16x32xf32, #tpu.memory_space<vmem>>, vector<16x32xf32>
      %c0_111 = arith.constant 0 : index
      %c0_112 = arith.constant 0 : index
      %294 = vector.load %arg3[%c0_111, %c0_112] : memref<1x32xf32, #tpu.memory_space<vmem>>, vector<1x32xf32>
      %c0_113 = arith.constant 0 : index
      %c0_114 = arith.constant 0 : index
      %295 = vector.load %arg4[%c0_113, %c0_114] : memref<1x32xf32, #tpu.memory_space<vmem>>, vector<1x32xf32>
      %cst_115 = arith.constant dense<0.000000e+00> : vector<16xf32>
      %296 = vector.multi_reduction <add>, %293, %cst_115 [1] : vector<16x32xf32> to vector<16xf32>
      %297 = vector.shape_cast %296 : vector<16xf32> to vector<16x1xf32>
      %cst_116 = arith.constant 3.200000e+01 : f32
      %298 = vector.broadcast %cst_116 : f32 to vector<16x1xf32>
      %299 = arith.divf %297, %298 : vector<16x1xf32>
      %300 = vector.broadcast %299 : vector<16x1xf32> to vector<16x32xf32>
      %301 = arith.subf %293, %300 : vector<16x32xf32>
      %302 = arith.mulf %301, %301 : vector<16x32xf32>
      %cst_117 = arith.constant dense<0.000000e+00> : vector<16xf32>
      %303 = vector.multi_reduction <add>, %302, %cst_117 [1] : vector<16x32xf32> to vector<16xf32>
      %304 = vector.shape_cast %303 : vector<16xf32> to vector<16x1xf32>
      %cst_118 = arith.constant 3.200000e+01 : f32
      %305 = vector.broadcast %cst_118 : f32 to vector<16x1xf32>
      %306 = arith.divf %304, %305 : vector<16x1xf32>
      %307 = vector.broadcast %299 : vector<16x1xf32> to vector<16x32xf32>
      %308 = arith.subf %293, %307 : vector<16x32xf32>
      %cst_119 = arith.constant 9.99999996E-13 : f32
      %309 = vector.broadcast %cst_119 : f32 to vector<16x1xf32>
      %310 = arith.addf %306, %309 : vector<16x1xf32>
      %311 = math.rsqrt %310 : vector<16x1xf32>
      %312 = vector.broadcast %311 : vector<16x1xf32> to vector<16x32xf32>
      %313 = arith.mulf %308, %312 : vector<16x32xf32>
      %314 = vector.broadcast %294 : vector<1x32xf32> to vector<16x32xf32>
      %315 = arith.mulf %313, %314 : vector<16x32xf32>
      %316 = vector.broadcast %295 : vector<1x32xf32> to vector<16x32xf32>
      %317 = arith.addf %315, %316 : vector<16x32xf32>
      %c0_120 = arith.constant 0 : index
      %c0_121 = arith.constant 0 : index
      %318 = vector.load %arg22[%c0_120, %c0_121] : memref<16x32xf32, #tpu.memory_space<vmem>>, vector<16x32xf32>
      tpu.vector_store %arg22[%c0_120, %c0_121], %317 {strides = array<i32>} : memref<16x32xf32, #tpu.memory_space<vmem>>, vector<16x32xf32>,
    } else {
    }
    %c0 = arith.constant 0 : index
    %c0_1 = arith.constant 0 : index
    %3 = vector.load %arg22[%c0, %c0_1] : memref<16x32xf32, #tpu.memory_space<vmem>>, vector<16x32xf32>
    %c0_2 = arith.constant 0 : index
    %c0_3 = arith.constant 0 : index
    %c0_4 = arith.constant 0 : index
    %4 = vector.load %arg5[%c0_2, %c0_3, %c0_4] : memref<1x32x96xf32, #tpu.memory_space<vmem>>, vector<1x32x96xf32>
    %5 = vector.shape_cast %4 : vector<1x32x96xf32> to vector<32x96xf32>
    %cst = arith.constant dense<0.000000e+00> : vector<16x96xf32>
    %6 = tpu.matmul %3, %5, %cst {dimension_numbers = #tpu.dot_dimension_numbers<[1], [0], [0], [1], [0, 0, 1, 1], [], []>} : vector<16x32xf32>, vector<32x96xf32>, vector<16x96xf32> -> vector<16x96xf32>
    %c0_5 = arith.constant 0 : index
    %c0_6 = arith.constant 0 : index
    %c0_7 = arith.constant 0 : index
    %7 = vector.load %arg6[%c0_5, %c0_6, %c0_7] : memref<1x1x96xf32, #tpu.memory_space<vmem>>, vector<1x1x96xf32>
    %8 = vector.shape_cast %7 : vector<1x1x96xf32> to vector<1x96xf32>
    %9 = vector.broadcast %8 : vector<1x96xf32> to vector<16x96xf32>
    %10 = arith.addf %6, %9 : vector<16x96xf32>
    %11 = vector.extract_strided_slice %10 {offsets = [0, 0], sizes = [16, 32], strides = [1, 1]} : vector<16x96xf32> to vector<16x32xf32>
    %12 = vector.extract_strided_slice %10 {offsets = [0, 32], sizes = [16, 32], strides = [1, 1]} : vector<16x96xf32> to vector<16x32xf32>
    %13 = vector.extract_strided_slice %10 {offsets = [0, 64], sizes = [16, 32], strides = [1, 1]} : vector<16x96xf32> to vector<16x32xf32>
    %c0_8 = arith.constant 0 : index
    %c0_9 = arith.constant 0 : index
    %14 = vector.load %arg2[%c0_8, %c0_9] : memref<2x8xf32, #tpu.memory_space<vmem>>, vector<2x8xf32>
    %c0_10 = arith.constant 0 : index
    %c0_11 = arith.constant 0 : index
    %c0_12 = arith.constant 0 : index
    %15 = vector.load %arg7[%c0_10, %c0_11, %c0_12] : memref<1x32x32xf32, #tpu.memory_space<vmem>>, vector<1x32x32xf32>
    %16 = vector.shape_cast %15 : vector<1x32x32xf32> to vector<32x32xf32>
    %17 = vector.extract_strided_slice %11 {offsets = [0, 0], sizes = [8, 32], strides = [1, 1]} : vector<16x32xf32> to vector<8x32xf32>
    %18 = vector.extract_strided_slice %12 {offsets = [0, 0], sizes = [8, 32], strides = [1, 1]} : vector<16x32xf32> to vector<8x32xf32>
    %19 = vector.extract_strided_slice %13 {offsets = [0, 0], sizes = [8, 32], strides = [1, 1]} : vector<16x32xf32> to vector<8x32xf32>
    %20 = vector.extract_strided_slice %14 {offsets = [0, 0], sizes = [1, 8], strides = [1, 1]} : vector<2x8xf32> to vector<1x8xf32>
    %cst_13 = arith.constant 0.000000e+00 : f32
    %21 = vector.broadcast %cst_13 : f32 to vector<8x32xf32>
    %22 = vector.extract_strided_slice %17 {offsets = [0, 0], sizes = [8, 8], strides = [1, 1]} : vector<8x32xf32> to vector<8x8xf32>
    %23 = vector.extract_strided_slice %18 {offsets = [0, 0], sizes = [8, 8], strides = [1, 1]} : vector<8x32xf32> to vector<8x8xf32>
    %24 = vector.extract_strided_slice %19 {offsets = [0, 0], sizes = [8, 8], strides = [1, 1]} : vector<8x32xf32> to vector<8x8xf32>
    %cst_14 = arith.constant dense<0.000000e+00> : vector<8x8xf32>
    %25 = tpu.matmul %22, %23, %cst_14 {dimension_numbers = #tpu.dot_dimension_numbers<[1], [1], [0], [0], [0, 0, 1, 0], [], []>} : vector<8x8xf32>, vector<8x8xf32>, vector<8x8xf32> -> vector<8x8xf32>
    %cst_15 = arith.constant 0.353553385 : f32
    %26 = vector.broadcast %cst_15 : f32 to vector<8x8xf32>
    %27 = arith.mulf %25, %26 : vector<8x8xf32>
    %28 = vector.broadcast %20 : vector<1x8xf32> to vector<8x8xf32>
    %29 = arith.addf %27, %28 : vector<8x8xf32>
    %cst_16 = arith.constant dense<0xFF800000> : vector<8xf32>
    %30 = vector.multi_reduction <maximumf>, %29, %cst_16 [1] : vector<8x8xf32> to vector<8xf32>
    %31 = vector.shape_cast %30 : vector<8xf32> to vector<8x1xf32>
    %32 = vector.broadcast %31 : vector<8x1xf32> to vector<8x8xf32>
    %33 = arith.subf %29, %32 : vector<8x8xf32>
    %34 = math.exp %33 : vector<8x8xf32>
    %cst_17 = arith.constant dense<0.000000e+00> : vector<8xf32>
    %35 = vector.multi_reduction <add>, %34, %cst_17 [1] : vector<8x8xf32> to vector<8xf32>
    %36 = vector.shape_cast %35 : vector<8xf32> to vector<8x1xf32>
    %37 = tpu.reciprocal %36 {approx = true} : vector<8x1xf32> -> vector<8x1xf32>
    %38 = vector.broadcast %37 : vector<8x1xf32> to vector<8x8xf32>
    %39 = arith.mulf %34, %38 : vector<8x8xf32>
    %cst_18 = arith.constant dense<0.000000e+00> : vector<8x8xf32>
    %40 = tpu.matmul %39, %24, %cst_18 {dimension_numbers = #tpu.dot_dimension_numbers<[1], [0], [0], [1], [0, 0, 1, 1], [], []>} : vector<8x8xf32>, vector<8x8xf32>, vector<8x8xf32> -> vector<8x8xf32>
    %41 = vector.extract_strided_slice %16 {offsets = [0, 0], sizes = [8, 32], strides = [1, 1]} : vector<32x32xf32> to vector<8x32xf32>
    %cst_19 = arith.constant dense<0.000000e+00> : vector<8x32xf32>
    %42 = tpu.matmul %40, %41, %cst_19 {dimension_numbers = #tpu.dot_dimension_numbers<[1], [0], [0], [1], [0, 0, 1, 1], [], []>} : vector<8x8xf32>, vector<8x32xf32>, vector<8x32xf32> -> vector<8x32xf32>
    %43 = arith.addf %21, %42 : vector<8x32xf32>
    %44 = vector.extract_strided_slice %17 {offsets = [0, 8], sizes = [8, 8], strides = [1, 1]} : vector<8x32xf32> to vector<8x8xf32>
    %45 = vector.extract_strided_slice %18 {offsets = [0, 8], sizes = [8, 8], strides = [1, 1]} : vector<8x32xf32> to vector<8x8xf32>
    %46 = vector.extract_strided_slice %19 {offsets = [0, 8], sizes = [8, 8], strides = [1, 1]} : vector<8x32xf32> to vector<8x8xf32>
    %cst_20 = arith.constant dense<0.000000e+00> : vector<8x8xf32>
    %47 = tpu.matmul %44, %45, %cst_20 {dimension_numbers = #tpu.dot_dimension_numbers<[1], [1], [0], [0], [0, 0, 1, 0], [], []>} : vector<8x8xf32>, vector<8x8xf32>, vector<8x8xf32> -> vector<8x8xf32>
    %cst_21 = arith.constant 0.353553385 : f32
    %48 = vector.broadcast %cst_21 : f32 to vector<8x8xf32>
    %49 = arith.mulf %47, %48 : vector<8x8xf32>
    %50 = vector.broadcast %20 : vector<1x8xf32> to vector<8x8xf32>
    %51 = arith.addf %49, %50 : vector<8x8xf32>
    %cst_22 = arith.constant dense<0xFF800000> : vector<8xf32>
    %52 = vector.multi_reduction <maximumf>, %51, %cst_22 [1] : vector<8x8xf32> to vector<8xf32>
    %53 = vector.shape_cast %52 : vector<8xf32> to vector<8x1xf32>
    %54 = vector.broadcast %53 : vector<8x1xf32> to vector<8x8xf32>
    %55 = arith.subf %51, %54 : vector<8x8xf32>
    %56 = math.exp %55 : vector<8x8xf32>
    %cst_23 = arith.constant dense<0.000000e+00> : vector<8xf32>
    %57 = vector.multi_reduction <add>, %56, %cst_23 [1] : vector<8x8xf32> to vector<8xf32>
    %58 = vector.shape_cast %57 : vector<8xf32> to vector<8x1xf32>
    %59 = tpu.reciprocal %58 {approx = true} : vector<8x1xf32> -> vector<8x1xf32>
    %60 = vector.broadcast %59 : vector<8x1xf32> to vector<8x8xf32>
    %61 = arith.mulf %56, %60 : vector<8x8xf32>
    %cst_24 = arith.constant dense<0.000000e+00> : vector<8x8xf32>
    %62 = tpu.matmul %61, %46, %cst_24 {dimension_numbers = #tpu.dot_dimension_numbers<[1], [0], [0], [1], [0, 0, 1, 1], [], []>} : vector<8x8xf32>, vector<8x8xf32>, vector<8x8xf32> -> vector<8x8xf32>
    %63 = vector.extract_strided_slice %16 {offsets = [8, 0], sizes = [8, 32], strides = [1, 1]} : vector<32x32xf32> to vector<8x32xf32>
    %cst_25 = arith.constant dense<0.000000e+00> : vector<8x32xf32>
    %64 = tpu.matmul %62, %63, %cst_25 {dimension_numbers = #tpu.dot_dimension_numbers<[1], [0], [0], [1], [0, 0, 1, 1], [], []>} : vector<8x8xf32>, vector<8x32xf32>, vector<8x32xf32> -> vector<8x32xf32>
    %65 = arith.addf %43, %64 : vector<8x32xf32>
    %66 = vector.extract_strided_slice %17 {offsets = [0, 16], sizes = [8, 8], strides = [1, 1]} : vector<8x32xf32> to vector<8x8xf32>
    %67 = vector.extract_strided_slice %18 {offsets = [0, 16], sizes = [8, 8], strides = [1, 1]} : vector<8x32xf32> to vector<8x8xf32>
    %68 = vector.extract_strided_slice %19 {offsets = [0, 16], sizes = [8, 8], strides = [1, 1]} : vector<8x32xf32> to vector<8x8xf32>
    %cst_26 = arith.constant dense<0.000000e+00> : vector<8x8xf32>
    %69 = tpu.matmul %66, %67, %cst_26 {dimension_numbers = #tpu.dot_dimension_numbers<[1], [1], [0], [0], [0, 0, 1, 0], [], []>} : vector<8x8xf32>, vector<8x8xf32>, vector<8x8xf32> -> vector<8x8xf32>
    %cst_27 = arith.constant 0.353553385 : f32
    %70 = vector.broadcast %cst_27 : f32 to vector<8x8xf32>
    %71 = arith.mulf %69, %70 : vector<8x8xf32>
    %72 = vector.broadcast %20 : vector<1x8xf32> to vector<8x8xf32>
    %73 = arith.addf %71, %72 : vector<8x8xf32>
    %cst_28 = arith.constant dense<0xFF800000> : vector<8xf32>
    %74 = vector.multi_reduction <maximumf>, %73, %cst_28 [1] : vector<8x8xf32> to vector<8xf32>
    %75 = vector.shape_cast %74 : vector<8xf32> to vector<8x1xf32>
    %76 = vector.broadcast %75 : vector<8x1xf32> to vector<8x8xf32>
    %77 = arith.subf %73, %76 : vector<8x8xf32>
    %78 = math.exp %77 : vector<8x8xf32>
    %cst_29 = arith.constant dense<0.000000e+00> : vector<8xf32>
    %79 = vector.multi_reduction <add>, %78, %cst_29 [1] : vector<8x8xf32> to vector<8xf32>
    %80 = vector.shape_cast %79 : vector<8xf32> to vector<8x1xf32>
    %81 = tpu.reciprocal %80 {approx = true} : vector<8x1xf32> -> vector<8x1xf32>
    %82 = vector.broadcast %81 : vector<8x1xf32> to vector<8x8xf32>
    %83 = arith.mulf %78, %82 : vector<8x8xf32>
    %cst_30 = arith.constant dense<0.000000e+00> : vector<8x8xf32>
    %84 = tpu.matmul %83, %68, %cst_30 {dimension_numbers = #tpu.dot_dimension_numbers<[1], [0], [0], [1], [0, 0, 1, 1], [], []>} : vector<8x8xf32>, vector<8x8xf32>, vector<8x8xf32> -> vector<8x8xf32>
    %85 = vector.extract_strided_slice %16 {offsets = [16, 0], sizes = [8, 32], strides = [1, 1]} : vector<32x32xf32> to vector<8x32xf32>
    %cst_31 = arith.constant dense<0.000000e+00> : vector<8x32xf32>
    %86 = tpu.matmul %84, %85, %cst_31 {dimension_numbers = #tpu.dot_dimension_numbers<[1], [0], [0], [1], [0, 0, 1, 1], [], []>} : vector<8x8xf32>, vector<8x32xf32>, vector<8x32xf32> -> vector<8x32xf32>
    %87 = arith.addf %65, %86 : vector<8x32xf32>
    %88 = vector.extract_strided_slice %17 {offsets = [0, 24], sizes = [8, 8], strides = [1, 1]} : vector<8x32xf32> to vector<8x8xf32>
    %89 = vector.extract_strided_slice %18 {offsets = [0, 24], sizes = [8, 8], strides = [1, 1]} : vector<8x32xf32> to vector<8x8xf32>
    %90 = vector.extract_strided_slice %19 {offsets = [0, 24], sizes = [8, 8], strides = [1, 1]} : vector<8x32xf32> to vector<8x8xf32>
    %cst_32 = arith.constant dense<0.000000e+00> : vector<8x8xf32>
    %91 = tpu.matmul %88, %89, %cst_32 {dimension_numbers = #tpu.dot_dimension_numbers<[1], [1], [0], [0], [0, 0, 1, 0], [], []>} : vector<8x8xf32>, vector<8x8xf32>, vector<8x8xf32> -> vector<8x8xf32>
    %cst_33 = arith.constant 0.353553385 : f32
    %92 = vector.broadcast %cst_33 : f32 to vector<8x8xf32>
    %93 = arith.mulf %91, %92 : vector<8x8xf32>
    %94 = vector.broadcast %20 : vector<1x8xf32> to vector<8x8xf32>
    %95 = arith.addf %93, %94 : vector<8x8xf32>
    %cst_34 = arith.constant dense<0xFF800000> : vector<8xf32>
    %96 = vector.multi_reduction <maximumf>, %95, %cst_34 [1] : vector<8x8xf32> to vector<8xf32>
    %97 = vector.shape_cast %96 : vector<8xf32> to vector<8x1xf32>
    %98 = vector.broadcast %97 : vector<8x1xf32> to vector<8x8xf32>
    %99 = arith.subf %95, %98 : vector<8x8xf32>
    %100 = math.exp %99 : vector<8x8xf32>
    %cst_35 = arith.constant dense<0.000000e+00> : vector<8xf32>
    %101 = vector.multi_reduction <add>, %100, %cst_35 [1] : vector<8x8xf32> to vector<8xf32>
    %102 = vector.shape_cast %101 : vector<8xf32> to vector<8x1xf32>
    %103 = tpu.reciprocal %102 {approx = true} : vector<8x1xf32> -> vector<8x1xf32>
    %104 = vector.broadcast %103 : vector<8x1xf32> to vector<8x8xf32>
    %105 = arith.mulf %100, %104 : vector<8x8xf32>
    %cst_36 = arith.constant dense<0.000000e+00> : vector<8x8xf32>
    %106 = tpu.matmul %105, %90, %cst_36 {dimension_numbers = #tpu.dot_dimension_numbers<[1], [0], [0], [1], [0, 0, 1, 1], [], []>} : vector<8x8xf32>, vector<8x8xf32>, vector<8x8xf32> -> vector<8x8xf32>
    %107 = vector.extract_strided_slice %16 {offsets = [24, 0], sizes = [8, 32], strides = [1, 1]} : vector<32x32xf32> to vector<8x32xf32>
    %cst_37 = arith.constant dense<0.000000e+00> : vector<8x32xf32>
    %108 = tpu.matmul %106, %107, %cst_37 {dimension_numbers = #tpu.dot_dimension_numbers<[1], [0], [0], [1], [0, 0, 1, 1], [], []>} : vector<8x8xf32>, vector<8x32xf32>, vector<8x32xf32> -> vector<8x32xf32>
    %109 = arith.addf %87, %108 : vector<8x32xf32>
    %110 = vector.extract_strided_slice %11 {offsets = [8, 0], sizes = [8, 32], strides = [1, 1]} : vector<16x32xf32> to vector<8x32xf32>
    %111 = vector.extract_strided_slice %12 {offsets = [8, 0], sizes = [8, 32], strides = [1, 1]} : vector<16x32xf32> to vector<8x32xf32>
    %112 = vector.extract_strided_slice %13 {offsets = [8, 0], sizes = [8, 32], strides = [1, 1]} : vector<16x32xf32> to vector<8x32xf32>
    %113 = vector.extract_strided_slice %14 {offsets = [1, 0], sizes = [1, 8], strides = [1, 1]} : vector<2x8xf32> to vector<1x8xf32>
    %cst_38 = arith.constant 0.000000e+00 : f32
    %114 = vector.broadcast %cst_38 : f32 to vector<8x32xf32>
    %115 = vector.extract_strided_slice %110 {offsets = [0, 0], sizes = [8, 8], strides = [1, 1]} : vector<8x32xf32> to vector<8x8xf32>
    %116 = vector.extract_strided_slice %111 {offsets = [0, 0], sizes = [8, 8], strides = [1, 1]} : vector<8x32xf32> to vector<8x8xf32>
    %117 = vector.extract_strided_slice %112 {offsets = [0, 0], sizes = [8, 8], strides = [1, 1]} : vector<8x32xf32> to vector<8x8xf32>
    %cst_39 = arith.constant dense<0.000000e+00> : vector<8x8xf32>
    %118 = tpu.matmul %115, %116, %cst_39 {dimension_numbers = #tpu.dot_dimension_numbers<[1], [1], [0], [0], [0, 0, 1, 0], [], []>} : vector<8x8xf32>, vector<8x8xf32>, vector<8x8xf32> -> vector<8x8xf32>
    %cst_40 = arith.constant 0.353553385 : f32
    %119 = vector.broadcast %cst_40 : f32 to vector<8x8xf32>
    %120 = arith.mulf %118, %119 : vector<8x8xf32>
    %121 = vector.broadcast %113 : vector<1x8xf32> to vector<8x8xf32>
    %122 = arith.addf %120, %121 : vector<8x8xf32>
    %cst_41 = arith.constant dense<0xFF800000> : vector<8xf32>
    %123 = vector.multi_reduction <maximumf>, %122, %cst_41 [1] : vector<8x8xf32> to vector<8xf32>
    %124 = vector.shape_cast %123 : vector<8xf32> to vector<8x1xf32>
    %125 = vector.broadcast %124 : vector<8x1xf32> to vector<8x8xf32>
    %126 = arith.subf %122, %125 : vector<8x8xf32>
    %127 = math.exp %126 : vector<8x8xf32>
    %cst_42 = arith.constant dense<0.000000e+00> : vector<8xf32>
    %128 = vector.multi_reduction <add>, %127, %cst_42 [1] : vector<8x8xf32> to vector<8xf32>
    %129 = vector.shape_cast %128 : vector<8xf32> to vector<8x1xf32>
    %130 = tpu.reciprocal %129 {approx = true} : vector<8x1xf32> -> vector<8x1xf32>
    %131 = vector.broadcast %130 : vector<8x1xf32> to vector<8x8xf32>
    %132 = arith.mulf %127, %131 : vector<8x8xf32>
    %cst_43 = arith.constant dense<0.000000e+00> : vector<8x8xf32>
    %133 = tpu.matmul %132, %117, %cst_43 {dimension_numbers = #tpu.dot_dimension_numbers<[1], [0], [0], [1], [0, 0, 1, 1], [], []>} : vector<8x8xf32>, vector<8x8xf32>, vector<8x8xf32> -> vector<8x8xf32>
    %134 = vector.extract_strided_slice %16 {offsets = [0, 0], sizes = [8, 32], strides = [1, 1]} : vector<32x32xf32> to vector<8x32xf32>
    %cst_44 = arith.constant dense<0.000000e+00> : vector<8x32xf32>
    %135 = tpu.matmul %133, %134, %cst_44 {dimension_numbers = #tpu.dot_dimension_numbers<[1], [0], [0], [1], [0, 0, 1, 1], [], []>} : vector<8x8xf32>, vector<8x32xf32>, vector<8x32xf32> -> vector<8x32xf32>
    %136 = arith.addf %114, %135 : vector<8x32xf32>
    %137 = vector.extract_strided_slice %110 {offsets = [0, 8], sizes = [8, 8], strides = [1, 1]} : vector<8x32xf32> to vector<8x8xf32>
    %138 = vector.extract_strided_slice %111 {offsets = [0, 8], sizes = [8, 8], strides = [1, 1]} : vector<8x32xf32> to vector<8x8xf32>
    %139 = vector.extract_strided_slice %112 {offsets = [0, 8], sizes = [8, 8], strides = [1, 1]} : vector<8x32xf32> to vector<8x8xf32>
    %cst_45 = arith.constant dense<0.000000e+00> : vector<8x8xf32>
    %140 = tpu.matmul %137, %138, %cst_45 {dimension_numbers = #tpu.dot_dimension_numbers<[1], [1], [0], [0], [0, 0, 1, 0], [], []>} : vector<8x8xf32>, vector<8x8xf32>, vector<8x8xf32> -> vector<8x8xf32>
    %cst_46 = arith.constant 0.353553385 : f32
    %141 = vector.broadcast %cst_46 : f32 to vector<8x8xf32>
    %142 = arith.mulf %140, %141 : vector<8x8xf32>
    %143 = vector.broadcast %113 : vector<1x8xf32> to vector<8x8xf32>
    %144 = arith.addf %142, %143 : vector<8x8xf32>
    %cst_47 = arith.constant dense<0xFF800000> : vector<8xf32>
    %145 = vector.multi_reduction <maximumf>, %144, %cst_47 [1] : vector<8x8xf32> to vector<8xf32>
    %146 = vector.shape_cast %145 : vector<8xf32> to vector<8x1xf32>
    %147 = vector.broadcast %146 : vector<8x1xf32> to vector<8x8xf32>
    %148 = arith.subf %144, %147 : vector<8x8xf32>
    %149 = math.exp %148 : vector<8x8xf32>
    %cst_48 = arith.constant dense<0.000000e+00> : vector<8xf32>
    %150 = vector.multi_reduction <add>, %149, %cst_48 [1] : vector<8x8xf32> to vector<8xf32>
    %151 = vector.shape_cast %150 : vector<8xf32> to vector<8x1xf32>
    %152 = tpu.reciprocal %151 {approx = true} : vector<8x1xf32> -> vector<8x1xf32>
    %153 = vector.broadcast %152 : vector<8x1xf32> to vector<8x8xf32>
    %154 = arith.mulf %149, %153 : vector<8x8xf32>
    %cst_49 = arith.constant dense<0.000000e+00> : vector<8x8xf32>
    %155 = tpu.matmul %154, %139, %cst_49 {dimension_numbers = #tpu.dot_dimension_numbers<[1], [0], [0], [1], [0, 0, 1, 1], [], []>} : vector<8x8xf32>, vector<8x8xf32>, vector<8x8xf32> -> vector<8x8xf32>
    %156 = vector.extract_strided_slice %16 {offsets = [8, 0], sizes = [8, 32], strides = [1, 1]} : vector<32x32xf32> to vector<8x32xf32>
    %cst_50 = arith.constant dense<0.000000e+00> : vector<8x32xf32>
    %157 = tpu.matmul %155, %156, %cst_50 {dimension_numbers = #tpu.dot_dimension_numbers<[1], [0], [0], [1], [0, 0, 1, 1], [], []>} : vector<8x8xf32>, vector<8x32xf32>, vector<8x32xf32> -> vector<8x32xf32>
    %158 = arith.addf %136, %157 : vector<8x32xf32>
    %159 = vector.extract_strided_slice %110 {offsets = [0, 16], sizes = [8, 8], strides = [1, 1]} : vector<8x32xf32> to vector<8x8xf32>
    %160 = vector.extract_strided_slice %111 {offsets = [0, 16], sizes = [8, 8], strides = [1, 1]} : vector<8x32xf32> to vector<8x8xf32>
    %161 = vector.extract_strided_slice %112 {offsets = [0, 16], sizes = [8, 8], strides = [1, 1]} : vector<8x32xf32> to vector<8x8xf32>
    %cst_51 = arith.constant dense<0.000000e+00> : vector<8x8xf32>
    %162 = tpu.matmul %159, %160, %cst_51 {dimension_numbers = #tpu.dot_dimension_numbers<[1], [1], [0], [0], [0, 0, 1, 0], [], []>} : vector<8x8xf32>, vector<8x8xf32>, vector<8x8xf32> -> vector<8x8xf32>
    %cst_52 = arith.constant 0.353553385 : f32
    %163 = vector.broadcast %cst_52 : f32 to vector<8x8xf32>
    %164 = arith.mulf %162, %163 : vector<8x8xf32>
    %165 = vector.broadcast %113 : vector<1x8xf32> to vector<8x8xf32>
    %166 = arith.addf %164, %165 : vector<8x8xf32>
    %cst_53 = arith.constant dense<0xFF800000> : vector<8xf32>
    %167 = vector.multi_reduction <maximumf>, %166, %cst_53 [1] : vector<8x8xf32> to vector<8xf32>
    %168 = vector.shape_cast %167 : vector<8xf32> to vector<8x1xf32>
    %169 = vector.broadcast %168 : vector<8x1xf32> to vector<8x8xf32>
    %170 = arith.subf %166, %169 : vector<8x8xf32>
    %171 = math.exp %170 : vector<8x8xf32>
    %cst_54 = arith.constant dense<0.000000e+00> : vector<8xf32>
    %172 = vector.multi_reduction <add>, %171, %cst_54 [1] : vector<8x8xf32> to vector<8xf32>
    %173 = vector.shape_cast %172 : vector<8xf32> to vector<8x1xf32>
    %174 = tpu.reciprocal %173 {approx = true} : vector<8x1xf32> -> vector<8x1xf32>
    %175 = vector.broadcast %174 : vector<8x1xf32> to vector<8x8xf32>
    %176 = arith.mulf %171, %175 : vector<8x8xf32>
    %cst_55 = arith.constant dense<0.000000e+00> : vector<8x8xf32>
    %177 = tpu.matmul %176, %161, %cst_55 {dimension_numbers = #tpu.dot_dimension_numbers<[1], [0], [0], [1], [0, 0, 1, 1], [], []>} : vector<8x8xf32>, vector<8x8xf32>, vector<8x8xf32> -> vector<8x8xf32>
    %178 = vector.extract_strided_slice %16 {offsets = [16, 0], sizes = [8, 32], strides = [1, 1]} : vector<32x32xf32> to vector<8x32xf32>
    %cst_56 = arith.constant dense<0.000000e+00> : vector<8x32xf32>
    %179 = tpu.matmul %177, %178, %cst_56 {dimension_numbers = #tpu.dot_dimension_numbers<[1], [0], [0], [1], [0, 0, 1, 1], [], []>} : vector<8x8xf32>, vector<8x32xf32>, vector<8x32xf32> -> vector<8x32xf32>
    %180 = arith.addf %158, %179 : vector<8x32xf32>
    %181 = vector.extract_strided_slice %110 {offsets = [0, 24], sizes = [8, 8], strides = [1, 1]} : vector<8x32xf32> to vector<8x8xf32>
    %182 = vector.extract_strided_slice %111 {offsets = [0, 24], sizes = [8, 8], strides = [1, 1]} : vector<8x32xf32> to vector<8x8xf32>
    %183 = vector.extract_strided_slice %112 {offsets = [0, 24], sizes = [8, 8], strides = [1, 1]} : vector<8x32xf32> to vector<8x8xf32>
    %cst_57 = arith.constant dense<0.000000e+00> : vector<8x8xf32>
    %184 = tpu.matmul %181, %182, %cst_57 {dimension_numbers = #tpu.dot_dimension_numbers<[1], [1], [0], [0], [0, 0, 1, 0], [], []>} : vector<8x8xf32>, vector<8x8xf32>, vector<8x8xf32> -> vector<8x8xf32>
    %cst_58 = arith.constant 0.353553385 : f32
    %185 = vector.broadcast %cst_58 : f32 to vector<8x8xf32>
    %186 = arith.mulf %184, %185 : vector<8x8xf32>
    %187 = vector.broadcast %113 : vector<1x8xf32> to vector<8x8xf32>
    %188 = arith.addf %186, %187 : vector<8x8xf32>
    %cst_59 = arith.constant dense<0xFF800000> : vector<8xf32>
    %189 = vector.multi_reduction <maximumf>, %188, %cst_59 [1] : vector<8x8xf32> to vector<8xf32>
    %190 = vector.shape_cast %189 : vector<8xf32> to vector<8x1xf32>
    %191 = vector.broadcast %190 : vector<8x1xf32> to vector<8x8xf32>
    %192 = arith.subf %188, %191 : vector<8x8xf32>
    %193 = math.exp %192 : vector<8x8xf32>
    %cst_60 = arith.constant dense<0.000000e+00> : vector<8xf32>
    %194 = vector.multi_reduction <add>, %193, %cst_60 [1] : vector<8x8xf32> to vector<8xf32>
    %195 = vector.shape_cast %194 : vector<8xf32> to vector<8x1xf32>
    %196 = tpu.reciprocal %195 {approx = true} : vector<8x1xf32> -> vector<8x1xf32>
    %197 = vector.broadcast %196 : vector<8x1xf32> to vector<8x8xf32>
    %198 = arith.mulf %193, %197 : vector<8x8xf32>
    %cst_61 = arith.constant dense<0.000000e+00> : vector<8x8xf32>
    %199 = tpu.matmul %198, %183, %cst_61 {dimension_numbers = #tpu.dot_dimension_numbers<[1], [0], [0], [1], [0, 0, 1, 1], [], []>} : vector<8x8xf32>, vector<8x8xf32>, vector<8x8xf32> -> vector<8x8xf32>
    %200 = vector.extract_strided_slice %16 {offsets = [24, 0], sizes = [8, 32], strides = [1, 1]} : vector<32x32xf32> to vector<8x32xf32>
    %cst_62 = arith.constant dense<0.000000e+00> : vector<8x32xf32>
    %201 = tpu.matmul %199, %200, %cst_62 {dimension_numbers = #tpu.dot_dimension_numbers<[1], [0], [0], [1], [0, 0, 1, 1], [], []>} : vector<8x8xf32>, vector<8x32xf32>, vector<8x32xf32> -> vector<8x32xf32>
    %202 = arith.addf %180, %201 : vector<8x32xf32>
    %203 = tpu.concatenate %109, %202 in 0 : vector<8x32xf32>, vector<8x32xf32> -> vector<16x32xf32>
    %c0_63 = arith.constant 0 : index
    %c0_64 = arith.constant 0 : index
    %c0_65 = arith.constant 0 : index
    %204 = vector.load %arg8[%c0_63, %c0_64, %c0_65] : memref<1x1x32xf32, #tpu.memory_space<vmem>>, vector<1x1x32xf32>
    %205 = vector.shape_cast %204 : vector<1x1x32xf32> to vector<1x32xf32>
    %206 = vector.broadcast %205 : vector<1x32xf32> to vector<16x32xf32>
    %207 = arith.addf %203, %206 : vector<16x32xf32>
    %208 = arith.addf %207, %3 : vector<16x32xf32>
    %c0_66 = arith.constant 0 : index
    %c0_67 = arith.constant 0 : index
    %c0_68 = arith.constant 0 : index
    %209 = vector.load %arg9[%c0_66, %c0_67, %c0_68] : memref<1x1x32xf32, #tpu.memory_space<vmem>>, vector<1x1x32xf32>
    %210 = vector.shape_cast %209 : vector<1x1x32xf32> to vector<1x32xf32>
    %c0_69 = arith.constant 0 : index
    %c0_70 = arith.constant 0 : index
    %c0_71 = arith.constant 0 : index
    %211 = vector.load %arg10[%c0_69, %c0_70, %c0_71] : memref<1x1x32xf32, #tpu.memory_space<vmem>>, vector<1x1x32xf32>
    %212 = vector.shape_cast %211 : vector<1x1x32xf32> to vector<1x32xf32>
    %cst_72 = arith.constant dense<0.000000e+00> : vector<16xf32>
    %213 = vector.multi_reduction <add>, %208, %cst_72 [1] : vector<16x32xf32> to vector<16xf32>
    %214 = vector.shape_cast %213 : vector<16xf32> to vector<16x1xf32>
    %cst_73 = arith.constant 3.200000e+01 : f32
    %215 = vector.broadcast %cst_73 : f32 to vector<16x1xf32>
    %216 = arith.divf %214, %215 : vector<16x1xf32>
    %217 = vector.broadcast %216 : vector<16x1xf32> to vector<16x32xf32>
    %218 = arith.subf %208, %217 : vector<16x32xf32>
    %219 = arith.mulf %218, %218 : vector<16x32xf32>
    %cst_74 = arith.constant dense<0.000000e+00> : vector<16xf32>
    %220 = vector.multi_reduction <add>, %219, %cst_74 [1] : vector<16x32xf32> to vector<16xf32>
    %221 = vector.shape_cast %220 : vector<16xf32> to vector<16x1xf32>
    %cst_75 = arith.constant 3.200000e+01 : f32
    %222 = vector.broadcast %cst_75 : f32 to vector<16x1xf32>
    %223 = arith.divf %221, %222 : vector<16x1xf32>
    %224 = vector.broadcast %216 : vector<16x1xf32> to vector<16x32xf32>
    %225 = arith.subf %208, %224 : vector<16x32xf32>
    %cst_76 = arith.constant 9.99999996E-13 : f32
    %226 = vector.broadcast %cst_76 : f32 to vector<16x1xf32>
    %227 = arith.addf %223, %226 : vector<16x1xf32>
    %228 = math.rsqrt %227 : vector<16x1xf32>
    %229 = vector.broadcast %228 : vector<16x1xf32> to vector<16x32xf32>
    %230 = arith.mulf %225, %229 : vector<16x32xf32>
    %231 = vector.broadcast %210 : vector<1x32xf32> to vector<16x32xf32>
    %232 = arith.mulf %230, %231 : vector<16x32xf32>
    %233 = vector.broadcast %212 : vector<1x32xf32> to vector<16x32xf32>
    %234 = arith.addf %232, %233 : vector<16x32xf32>
    %c0_77 = arith.constant 0 : index
    %c0_78 = arith.constant 0 : index
    %c0_79 = arith.constant 0 : index
    %235 = vector.load %arg11[%c0_77, %c0_78, %c0_79] : memref<1x32x64xf32, #tpu.memory_space<vmem>>, vector<1x32x64xf32>
    %236 = vector.shape_cast %235 : vector<1x32x64xf32> to vector<32x64xf32>
    %cst_80 = arith.constant dense<0.000000e+00> : vector<16x64xf32>
    %237 = tpu.matmul %234, %236, %cst_80 {dimension_numbers = #tpu.dot_dimension_numbers<[1], [0], [0], [1], [0, 0, 1, 1], [], []>} : vector<16x32xf32>, vector<32x64xf32>, vector<16x64xf32> -> vector<16x64xf32>
    %c0_81 = arith.constant 0 : index
    %c0_82 = arith.constant 0 : index
    %c0_83 = arith.constant 0 : index
    %238 = vector.load %arg12[%c0_81, %c0_82, %c0_83] : memref<1x1x64xf32, #tpu.memory_space<vmem>>, vector<1x1x64xf32>
    %239 = vector.shape_cast %238 : vector<1x1x64xf32> to vector<1x64xf32>
    %240 = vector.broadcast %239 : vector<1x64xf32> to vector<16x64xf32>
    %241 = arith.addf %237, %240 : vector<16x64xf32>
    %242 = arith.mulf %241, %241 : vector<16x64xf32>
    %243 = arith.mulf %241, %242 : vector<16x64xf32>
    %cst_84 = arith.constant 4.471500e-02 : f32
    %244 = vector.broadcast %cst_84 : f32 to vector<16x64xf32>
    %245 = arith.mulf %244, %243 : vector<16x64xf32>
    %246 = arith.addf %241, %245 : vector<16x64xf32>
    %cst_85 = arith.constant 0.797884583 : f32
    %247 = vector.broadcast %cst_85 : f32 to vector<16x64xf32>
    %248 = arith.mulf %247, %246 : vector<16x64xf32>
    %249 = math.tanh %248 : vector<16x64xf32>
    %cst_86 = arith.constant 1.000000e+00 : f32
    %250 = vector.broadcast %cst_86 : f32 to vector<16x64xf32>
    %251 = arith.addf %250, %249 : vector<16x64xf32>
    %cst_87 = arith.constant 5.000000e-01 : f32
    %252 = vector.broadcast %cst_87 : f32 to vector<16x64xf32>
    %253 = arith.mulf %252, %251 : vector<16x64xf32>
    %254 = arith.mulf %241, %253 : vector<16x64xf32>
    %c0_88 = arith.constant 0 : index
    %c0_89 = arith.constant 0 : index
    %c0_90 = arith.constant 0 : index
    %255 = vector.load %arg13[%c0_88, %c0_89, %c0_90] : memref<1x64x32xf32, #tpu.memory_space<vmem>>, vector<1x64x32xf32>
    %256 = vector.shape_cast %255 : vector<1x64x32xf32> to vector<64x32xf32>
    %cst_91 = arith.constant dense<0.000000e+00> : vector<16x32xf32>
    %257 = tpu.matmul %254, %256, %cst_91 {dimension_numbers = #tpu.dot_dimension_numbers<[1], [0], [0], [1], [0, 0, 1, 1], [], []>} : vector<16x64xf32>, vector<64x32xf32>, vector<16x32xf32> -> vector<16x32xf32>
    %c0_92 = arith.constant 0 : index
    %c0_93 = arith.constant 0 : index
    %c0_94 = arith.constant 0 : index
    %258 = vector.load %arg14[%c0_92, %c0_93, %c0_94] : memref<1x1x32xf32, #tpu.memory_space<vmem>>, vector<1x1x32xf32>
    %259 = vector.shape_cast %258 : vector<1x1x32xf32> to vector<1x32xf32>
    %260 = vector.broadcast %259 : vector<1x32xf32> to vector<16x32xf32>
    %261 = arith.addf %257, %260 : vector<16x32xf32>
    %262 = arith.addf %261, %234 : vector<16x32xf32>
    %c0_95 = arith.constant 0 : index
    %c0_96 = arith.constant 0 : index
    %c0_97 = arith.constant 0 : index
    %263 = vector.load %arg15[%c0_95, %c0_96, %c0_97] : memref<1x1x32xf32, #tpu.memory_space<vmem>>, vector<1x1x32xf32>
    %264 = vector.shape_cast %263 : vector<1x1x32xf32> to vector<1x32xf32>
    %c0_98 = arith.constant 0 : index
    %c0_99 = arith.constant 0 : index
    %c0_100 = arith.constant 0 : index
    %265 = vector.load %arg16[%c0_98, %c0_99, %c0_100] : memref<1x1x32xf32, #tpu.memory_space<vmem>>, vector<1x1x32xf32>
    %266 = vector.shape_cast %265 : vector<1x1x32xf32> to vector<1x32xf32>
    %cst_101 = arith.constant dense<0.000000e+00> : vector<16xf32>
    %267 = vector.multi_reduction <add>, %262, %cst_101 [1] : vector<16x32xf32> to vector<16xf32>
    %268 = vector.shape_cast %267 : vector<16xf32> to vector<16x1xf32>
    %cst_102 = arith.constant 3.200000e+01 : f32
    %269 = vector.broadcast %cst_102 : f32 to vector<16x1xf32>
    %270 = arith.divf %268, %269 : vector<16x1xf32>
    %271 = vector.broadcast %270 : vector<16x1xf32> to vector<16x32xf32>
    %272 = arith.subf %262, %271 : vector<16x32xf32>
    %273 = arith.mulf %272, %272 : vector<16x32xf32>
    %cst_103 = arith.constant dense<0.000000e+00> : vector<16xf32>
    %274 = vector.multi_reduction <add>, %273, %cst_103 [1] : vector<16x32xf32> to vector<16xf32>
    %275 = vector.shape_cast %274 : vector<16xf32> to vector<16x1xf32>
    %cst_104 = arith.constant 3.200000e+01 : f32
    %276 = vector.broadcast %cst_104 : f32 to vector<16x1xf32>
    %277 = arith.divf %275, %276 : vector<16x1xf32>
    %278 = vector.broadcast %270 : vector<16x1xf32> to vector<16x32xf32>
    %279 = arith.subf %262, %278 : vector<16x32xf32>
    %cst_105 = arith.constant 9.99999996E-13 : f32
    %280 = vector.broadcast %cst_105 : f32 to vector<16x1xf32>
    %281 = arith.addf %277, %280 : vector<16x1xf32>
    %282 = math.rsqrt %281 : vector<16x1xf32>
    %283 = vector.broadcast %282 : vector<16x1xf32> to vector<16x32xf32>
    %284 = arith.mulf %279, %283 : vector<16x32xf32>
    %285 = vector.broadcast %264 : vector<1x32xf32> to vector<16x32xf32>
    %286 = arith.mulf %284, %285 : vector<16x32xf32>
    %287 = vector.broadcast %266 : vector<1x32xf32> to vector<16x32xf32>
    %288 = arith.addf %286, %287 : vector<16x32xf32>
    %c0_106 = arith.constant 0 : index
    %c0_107 = arith.constant 0 : index
    %289 = vector.load %arg22[%c0_106, %c0_107] : memref<16x32xf32, #tpu.memory_space<vmem>>, vector<16x32xf32>
    tpu.vector_store %arg22[%c0_106, %c0_107], %288 {strides = array<i32>} : memref<16x32xf32, #tpu.memory_space<vmem>>, vector<16x32xf32>,
    %c1_i32 = arith.constant 1 : i32
    %290 = arith.cmpi eq, %arg0, %c1_i32 : i32
    %291 = arith.extui %290 : i1 to i32
    %c0_i32_108 = arith.constant 0 : i32
    %292 = arith.cmpi ne, %291, %c0_i32_108 : i32
    scf.if %292 {
      %293 = vector.extract_strided_slice %288 {offsets = [0, 0], sizes = [1, 32], strides = [1, 1]} : vector<16x32xf32> to vector<1x32xf32>
      %294 = vector.extract_strided_slice %288 {offsets = [8, 0], sizes = [1, 32], strides = [1, 1]} : vector<16x32xf32> to vector<1x32xf32>
      %295 = tpu.concatenate %293, %294 in 0 : vector<1x32xf32>, vector<1x32xf32> -> vector<2x32xf32>
      %c0_109 = arith.constant 0 : index
      %c0_110 = arith.constant 0 : index
      %296 = vector.load %arg17[%c0_109, %c0_110] : memref<32x32xf32, #tpu.memory_space<vmem>>, vector<32x32xf32>
      %cst_111 = arith.constant dense<0.000000e+00> : vector<2x32xf32>
      %297 = tpu.matmul %295, %296, %cst_111 {dimension_numbers = #tpu.dot_dimension_numbers<[1], [0], [0], [1], [0, 0, 1, 1], [], []>} : vector<2x32xf32>, vector<32x32xf32>, vector<2x32xf32> -> vector<2x32xf32>
      %c0_112 = arith.constant 0 : index
      %c0_113 = arith.constant 0 : index
      %298 = vector.load %arg18[%c0_112, %c0_113] : memref<1x32xf32, #tpu.memory_space<vmem>>, vector<1x32xf32>
      %299 = vector.broadcast %298 : vector<1x32xf32> to vector<2x32xf32>
      %300 = arith.addf %297, %299 : vector<2x32xf32>
      %301 = math.tanh %300 : vector<2x32xf32>
      %c0_114 = arith.constant 0 : index
      %c0_115 = arith.constant 0 : index
      %302 = vector.load %arg19[%c0_114, %c0_115] : memref<32x2xf32, #tpu.memory_space<vmem>>, vector<32x2xf32>
      %cst_116 = arith.constant dense<0.000000e+00> : vector<2x2xf32>
      %303 = tpu.matmul %301, %302, %cst_116 {dimension_numbers = #tpu.dot_dimension_numbers<[1], [0], [0], [1], [0, 0, 1, 1], [], []>} : vector<2x32xf32>, vector<32x2xf32>, vector<2x2xf32> -> vector<2x2xf32>
      %c0_117 = arith.constant 0 : index
      %c0_118 = arith.constant 0 : index
      %304 = vector.load %arg20[%c0_117, %c0_118] : memref<1x2xf32, #tpu.memory_space<vmem>>, vector<1x2xf32>
      %305 = vector.broadcast %304 : vector<1x2xf32> to vector<2x2xf32>
      %306 = arith.addf %303, %305 : vector<2x2xf32>
      %c0_119 = arith.constant 0 : index
      %c0_120 = arith.constant 0 : index
      %307 = vector.load %arg21[%c0_119, %c0_120] : memref<2x2xf32, #tpu.memory_space<vmem>>, vector<2x2xf32>
      tpu.vector_store %arg21[%c0_119, %c0_120], %306 {strides = array<i32>} : memref<2x2xf32, #tpu.memory_space<vmem>>, vector<2x2xf32>,
    } else {
    }
    return
  }
  func.func @transform_0(%arg0: i32) -> (i32, i32) {
    %c0_i32 = arith.constant 0 : i32
    %c0_i32_0 = arith.constant 0 : i32
    %c0_i32_1 = arith.constant 0 : i32
    return %c0_i32, %c0_i32_0 : i32, i32
  }
  func.func @transform_1(%arg0: i32) -> (i32, i32) {
    %c0_i32 = arith.constant 0 : i32
    %c0_i32_0 = arith.constant 0 : i32
    %c0_i32_1 = arith.constant 0 : i32
    return %c0_i32, %c0_i32_0 : i32, i32
  }
  func.func @transform_2(%arg0: i32) -> (i32, i32) {
    %c0_i32 = arith.constant 0 : i32
    %c0_i32_0 = arith.constant 0 : i32
    %c0_i32_1 = arith.constant 0 : i32
    return %c0_i32, %c0_i32_0 : i32, i32
  }
  func.func @transform_3(%arg0: i32) -> (i32, i32) {
    %c0_i32 = arith.constant 0 : i32
    %c0_i32_0 = arith.constant 0 : i32
    %c0_i32_1 = arith.constant 0 : i32
    return %c0_i32, %c0_i32_0 : i32, i32
  }
  func.func @transform_4(%arg0: i32) -> (i32, i32, i32) {
    %c0_i32 = arith.constant 0 : i32
    %c0_i32_0 = arith.constant 0 : i32
    %c0_i32_1 = arith.constant 0 : i32
    return %arg0, %c0_i32, %c0_i32_0 : i32, i32, i32
  }
  func.func @transform_5(%arg0: i32) -> (i32, i32, i32) {
    %c0_i32 = arith.constant 0 : i32
    %c0_i32_0 = arith.constant 0 : i32
    %c0_i32_1 = arith.constant 0 : i32
    return %arg0, %c0_i32, %c0_i32_0 : i32, i32, i32
  }
  func.func @transform_6(%arg0: i32) -> (i32, i32, i32) {
    %c0_i32 = arith.constant 0 : i32
    %c0_i32_0 = arith.constant 0 : i32
    %c0_i32_1 = arith.constant 0 : i32
    return %arg0, %c0_i32, %c0_i32_0 : i32, i32, i32
  }
  func.func @transform_7(%arg0: i32) -> (i32, i32, i32) {
    %c0_i32 = arith.constant 0 : i32
    %c0_i32_0 = arith.constant 0 : i32
    %c0_i32_1 = arith.constant 0 : i32
    return %arg0, %c0_i32, %c0_i32_0 : i32, i32, i32
  }
  func.func @transform_8(%arg0: i32) -> (i32, i32, i32) {
    %c0_i32 = arith.constant 0 : i32
    %c0_i32_0 = arith.constant 0 : i32
    %c0_i32_1 = arith.constant 0 : i32
    return %arg0, %c0_i32, %c0_i32_0 : i32, i32, i32
  }
  func.func @transform_9(%arg0: i32) -> (i32, i32, i32) {
    %c0_i32 = arith.constant 0 : i32
    %c0_i32_0 = arith.constant 0 : i32
    %c0_i32_1 = arith.constant 0 : i32
    return %arg0, %c0_i32, %c0_i32_0 : i32, i32, i32
  }
  func.func @transform_10(%arg0: i32) -> (i32, i32, i32) {
    %c0_i32 = arith.constant 0 : i32
    %c0_i32_0 = arith.constant 0 : i32
    %c0_i32_1 = arith.constant 0 : i32
    return %arg0, %c0_i32, %c0_i32_0 : i32, i32, i32
  }
  func.func @transform_11(%arg0: i32) -> (i32, i32, i32) {
    %c0_i32 = arith.constant 0 : i32
    %c0_i32_0 = arith.constant 0 : i32
    %c0_i32_1 = arith.constant 0 : i32
    return %arg0, %c0_i32, %c0_i32_0 : i32, i32, i32
  }
  func.func @transform_12(%arg0: i32) -> (i32, i32, i32) {
    %c0_i32 = arith.constant 0 : i32
    %c0_i32_0 = arith.constant 0 : i32
    %c0_i32_1 = arith.constant 0 : i32
    return %arg0, %c0_i32, %c0_i32_0 : i32, i32, i32
  }
  func.func @transform_13(%arg0: i32) -> (i32, i32, i32) {
    %c0_i32 = arith.constant 0 : i32
    %c0_i32_0 = arith.constant 0 : i32
    %c0_i32_1 = arith.constant 0 : i32
    return %arg0, %c0_i32, %c0_i32_0 : i32, i32, i32
  }
  func.func @transform_14(%arg0: i32) -> (i32, i32, i32) {
    %c0_i32 = arith.constant 0 : i32
    %c0_i32_0 = arith.constant 0 : i32
    %c0_i32_1 = arith.constant 0 : i32
    return %arg0, %c0_i32, %c0_i32_0 : i32, i32, i32
  }
  func.func @transform_15(%arg0: i32) -> (i32, i32, i32) {
    %c0_i32 = arith.constant 0 : i32
    %c0_i32_0 = arith.constant 0 : i32
    %c0_i32_1 = arith.constant 0 : i32
    return %arg0, %c0_i32, %c0_i32_0 : i32, i32, i32
  }
  func.func @transform_16(%arg0: i32) -> (i32, i32) {
    %c0_i32 = arith.constant 0 : i32
    %c0_i32_0 = arith.constant 0 : i32
    %c0_i32_1 = arith.constant 0 : i32
    return %c0_i32, %c0_i32_0 : i32, i32
  }
  func.func @transform_17(%arg0: i32) -> (i32, i32) {
    %c0_i32 = arith.constant 0 : i32
    %c0_i32_0 = arith.constant 0 : i32
    %c0_i32_1 = arith.constant 0 : i32
    return %c0_i32, %c0_i32_0 : i32, i32
  }
  func.func @transform_18(%arg0: i32) -> (i32, i32) {
    %c0_i32 = arith.constant 0 : i32
    %c0_i32_0 = arith.constant 0 : i32
    %c0_i32_1 = arith.constant 0 : i32
    return %c0_i32, %c0_i32_0 : i32, i32
  }
  func.func @transform_19(%arg0: i32) -> (i32, i32) {
    %c0_i32 = arith.constant 0 : i32
    %c0_i32_0 = arith.constant 0 : i32
    %c0_i32_1 = arith.constant 0 : i32
    return %c0_i32, %c0_i32_0 : i32, i32
  }
  func.func @transform_20(%arg0: i32) -> (i32, i32) {
    %c0_i32 = arith.constant 0 : i32
    %c0_i32_0 = arith.constant 0 : i32
    %c0_i32_1 = arith.constant 0 : i32
    return %c0_i32, %c0_i32_0 : i32, i32
  }
}

</mosaic_0001>

<bundles_post_ra>
// kernel: tpu_custom_call.1
= control target key start
LH: loop header
LB: loop body
LE: loop exit
PB: predicated region body
PF: predicated region fallthrough
CT: control target
= control target key end

     0   :  { %s3377_s0 = inlined_call_operand.hbm [shape: f32[16,32], index: 0, kind: input, shape index: {}]   ;;  %s3378_s1 = inlined_call_operand.vmem [shape: f32[2,8], index: 1, kind: input, shape index: {}]   ;;  %s3379_s2 = inlined_call_operand.hbm [shape: f32[1,32], index: 2, kind: input, shape index: {}]   ;;  %s3380_s3 = inlined_call_operand.hbm [shape: f32[1,32], index: 3, kind: input, shape index: {}]   ;;  %s3381_s4 = inlined_call_operand.vmem [shape: f32[2,32,96], index: 4, kind: input, shape index: {}]   ;;  %s3382_s5 = inlined_call_operand.hbm [shape: f32[2,1,96], index: 5, kind: input, shape index: {}]   ;;  %s3383_s6 = inlined_call_operand.vmem [shape: f32[2,32,32], index: 6, kind: input, shape index: {}]   ;;  %s3384_s7 = inlined_call_operand.vmem [shape: f32[2,1,32], index: 7, kind: input, shape index: {}]   ;;  %s3385_s8 = inlined_call_operand.hbm [shape: f32[2,1,32], index: 8, kind: input, shape index: {}]   ;;  %s3386_s9 = inlined_call_operand.vmem [shape: f32[2,1,32], index: 9, kind: input, shape index: {}]   ;;  %s3387_s10 = inlined_call_operand.vmem [shape: f32[2,32,64], index: 10, kind: input, shape index: {}]   ;;  %s3388_s11 = inlined_call_operand.vmem [shape: f32[2,1,64], index: 11, kind: input, shape index: {}]   ;;  %s3389_s12 = inlined_call_operand.vmem [shape: f32[2,64,32], index: 12, kind: input, shape index: {}]   ;;  %s3390_s13 = inlined_call_operand.vmem [shape: f32[2,1,32], index: 13, kind: input, shape index: {}]   ;;  %s3391_s14 = inlined_call_operand.hbm [shape: f32[2,1,32], index: 14, kind: input, shape index: {}]   ;;  %s3392_s15 = inlined_call_operand.vmem [shape: f32[2,1,32], index: 15, kind: input, shape index: {}]   ;;  %s3393_s16 = inlined_call_operand.vmem [shape: f32[32,32], index: 16, kind: input, shape index: {}]   ;;  %s3394_s17 = inlined_call_operand.vmem [shape: f32[1,32], index: 17, kind: input, shape index: {}]   ;;  %s3395_s18 = inlined_call_operand.vmem [shape: f32[32,2], index: 18, kind: input, shape index: {}]   ;;  %s3396_s19 = inlined_call_operand.vmem [shape: f32[1,2], index: 19, kind: input, shape index: {}]   ;;  %s3397_s20 = inlined_call_operand.hbm [shape: f32[2,2], index: 20, kind: output, shape index: {}]  }
   0x1   :  { %3403 = sst [smem:[#allocation23_spill]] %s3377_s0 }
   0x2   :  { %3404 = sst [smem:[#allocation24_spill]] %s3378_s1 }
   0x3   :  { %3405 = sst [smem:[#allocation25_spill]] %s3379_s2 }
   0x4   :  { %3406 = sst [smem:[#allocation26_spill]] %s3380_s3 }
   0x5   :  { %3407 = sst [smem:[#allocation27_spill]] %s3381_s4 }
   0x6   :  { %3408 = sst [smem:[#allocation28_spill]] %s3382_s5 }
   0x7   :  { %3409 = sst [smem:[#allocation29_spill]] %s3383_s6 }
   0x8   :  { %3410 = sst [smem:[#allocation30_spill]] %s3388_s11 }
   0x9   :  { %3411 = sst [smem:[#allocation31_spill]] %s3389_s12 }
   0xa   :  { %3412 = sst [smem:[#allocation32_spill]] %s3390_s13 }
   0xb   :  { %3413 = sst [smem:[#allocation33_spill]] %s3392_s15 }
   0xc   :  { %3414 = sst [smem:[#allocation34_spill]] %s3393_s16 }
   0xd   :  { %3415 = sst [smem:[#allocation35_spill]] %s3394_s17 }
   0xe   :  { %3416 = sst [smem:[#allocation36_spill]] %s3395_s18 }
   0xf   :  { %3417 = sst [smem:[#allocation37_spill]] %s3396_s19 }
  0x10   :  { %3418 = sst [smem:[#allocation38_spill]] %s3397_s20 }
  0x11   :  { %25 = vsyncpa [#allocation4], 0 }
  0x12   :  { %26 = vsyncpa [#allocation7], 0 }
  0x13   :  { %27 = vsyncpa [#allocation10], 0 }
  0x14   :  { %29 = vsyncpa [#allocation10 + $0x1], 0 }
  0x15   :  { %30 = vsyncpa [#allocation13], 0 }
  0x16   :  { %32 = vsyncpa [#allocation13 + $0x1], 0 }
  0x17   :  { %33 = vsyncpa [#allocation5], 0  ;;  %s2876_s1 = smov 0   ;;  %s2878_s22 = smov 0  }
  0x18   :  { %s2880_s23 = smov 0   ;;  %s2882_s24 = smov 0  }
  0x19 LB: > { %3419 = sst [smem:[#allocation20_spill]] %s2746_s23  ;;  %s2895_s2 = sadd.s32 4294967295, %s2750_s24   ;;  %s2750_s24 = sphi %s2882_s24, %s3451_s24   ;;  %s2746_s23 = sphi %s2880_s23, %s3453_s23   ;;  %s2742_s22 = sphi %s2878_s22, %s3455_s22   ;;  %s2738_s1 = sphi %s2876_s1, %s3454_s1  }
  0x1a   : > { %p169_p0 = scmp.ne.s32.totalorder %s2742_s22, %s2738_s1  ;;  %p170_p1 = scmp.eq.s32.totalorder %s2895_s2, 0 }
  0x1b   : > { %p2253_p2 = scmp.ge.s32.totalorder %s2750_s24, 1  ;;  %p545_p3 = scmp.lt.s32.totalorder %s2750_s24, 3 }
  0x1c   : > { %p2254_p4 = scmp.ne.s32.totalorder %s2895_s2, 0  ;;  %p2904_p5 = por %p170_p1, %p169_p0 }
  0x1d   : > { %s3421_s27 = sld [smem:[#allocation25_spill]]  ;;  %p2911_p6 = pnand %p2253_p2, %p545_p3 }
  0x1e   : > { %s2752_s29 = smov [#allocation6]   ;;  %s2924_s21 = sadd.s32 1, %s2750_s24  }
  0x1f   : > { %p2346_p7 = pneg %p2911_p6  ;;  %s576_s30 = sshll.u32 %s2752_s29, 4  ;;  %s577_s30 = int_to_ptr.vmem [resolvable:$true] %s576_s30 }
  0x20   : > { %3424 = sst [smem:[#allocation21_spill]] %s2924_s21  ;;  %s156_s1 = sadd.s32 1, %s2746_s23 }
  0x21   : > { %p2919_p8 = pnand %p2346_p7, %p170_p1  ;;  %s153_s3 = ssub.s32 %s2750_s24, %s2924_s21 }
  0x22   : > { %p154_p9 = scmp.eq.s32.totalorder %s153_s3, 0  ;;  %p163_p10 = scmp.ne.s32.totalorder %s2746_s23, %s2742_s22 }
  0x23   : > { %s574_s28 = sshll.u32 %s3421_s27, 4  ;;  %p164_p11 = scmp.eq.s32.totalorder %s2750_s24, 0  ;;  %s575_s28 = int_to_ptr.hbm [resolvable:$true] %s574_s28 }
  0x24   : > { %2352 = dma.hbm_to_vmem [thread:$0]  (!%p2919_p8), %s575_s28, 16, %s577_s30, [#allocation7]  }
  0x25   : > { %p2369_p12 = scmp.lt.s32.totalorder %s2750_s24, 2  ;;  %p165_p13 = por %p164_p11, %p163_p10 }
  0x26   : > { %s2936_s26 = scalar_select %p154_p9, %s2746_s23, %s156_s1  }
  0x27   : > { %s619_s27 = sand.u32 1, %s2750_s24   ;;  %s2940_s29 = sand.u32 1, %s2746_s23  }
  0x28   : > { %3425 = sst [smem:[#allocation22_spill]] %s2936_s26  ;;  %s622_s16 = scalar_lea.vmem [#allocation9], %s2940_s29 }
  0x29   : > { %s3426_s5 = sld [smem:[#allocation28_spill]]  ;;  %s629_s21 = sshll.u32 %s622_s16, 4  ;;  %s630_s21 = int_to_ptr.vmem [resolvable:$true] %s629_s21 }
  0x2a   : > { %p2947_p0 = pnand %p2369_p12, %p165_p13  ;;  %s3428_s3 = sld [smem:[#allocation23_spill]] }
  0x2b   : > { %s2753_s23 = smov [#allocation3]   ;;  %s2954_s20 = scalar_lea.sflag [#allocation10], %s619_s27 }
  0x2c   : > { %s558_s19 = sshll.u32 %s2753_s23, 4  ;;  %p2526_p3 = pneg %p2947_p0  ;;  %s559_s19 = int_to_ptr.vmem [resolvable:$true] %s558_s19 }
  0x2f   : > { %s625_s17 = scalar_lea.hbm %s3426_s5, %s2750_s24  ;;  %s2529_s1 = scalar_lea.hbm %s3426_s5, 2 }
  0x30   : > { %s627_s18 = sshll.u32 %s625_s17, 4  ;;  %s556_s26 = sshll.u32 %s3428_s3, 4  ;;  %s628_s18 = int_to_ptr.hbm [resolvable:$true] %s627_s18  ;;  %s557_s26 = int_to_ptr.hbm [resolvable:$true] %s556_s26 }
  0x31   : > { %s2522_s17 = sshra.s32 %s628_s18, 4  ;;  %s2523_s17 = int_to_ptr.hbm [resolvable:$true] %s2522_s17 }
  0x32   : > { %s2524_s16 = scalar_lea.hbm %s2523_s17, 1  ;;  %p2530_p10 = scmp.lt.s32.totalorder %s2523_s17, %s3426_s5 }
  0x33   : > { %p2525_p2 = scmp.ne.s32.totalorder %s2523_s17, %s2524_s16  ;;  %p2531_p11 = scmp.lt.s32.totalorder %s2529_s1, %s2524_s16 }
  0x35   : > { %p2527_p7 = pnand %p2526_p3, %p2525_p2  ;;  %p2532_p12 = por %p2531_p11, %p2530_p10 }
  0x37   : > { %p2528_p9 = pneg %p2527_p7 }
  0x39   : > { %p2533_p13 = pnand %p2532_p12, %p2528_p9 }
  0x3b   : > { %2536 = shalt.err (!%p2533_p13)
}
  0x3c   : > { %2359 = dma.hbm_to_vmem [thread:$0]  (!%p2947_p0), %s628_s18, 16, %s630_s21, %s2954_s20  }
  0x3d   : > { %s3429_s27 = sld [smem:[#allocation26_spill]]  ;;  %s2754_s12 = smov 128  }
  0x3e   : > { %s2755_s13 = smov 8   ;;  %s2756_s17 = smov [#allocation8]  }
  0x3f   : > { %2349 = dma.hbm_to_vmem [thread:$0]  (!%p2919_p8), %s557_s26, 256, %s559_s19, [#allocation4], %s2754_s12, %s2754_s12, %s2755_s13  }
  0x40   : > { %s588_s16 = sshll.u32 %s2756_s17, 4  ;;  %s656_s5 = scalar_lea.hbm %s3385_s8, %s2750_s24  ;;  %s589_s16 = int_to_ptr.vmem [resolvable:$true] %s588_s16 }
  0x41   : > { %s658_s18 = sshll.u32 %s656_s5, 4  ;;  %s653_s21 = scalar_lea.vmem [#allocation11], %s2940_s29  ;;  %s659_s18 = int_to_ptr.hbm [resolvable:$true] %s658_s18 }
  0x42   : > { %s660_s11 = sshll.u32 %s653_s21, 4  ;;  %s2612_s23 = sshra.s32 %s659_s18, 4  ;;  %s661_s11 = int_to_ptr.vmem [resolvable:$true] %s660_s11  ;;  %s2613_s23 = int_to_ptr.hbm [resolvable:$true] %s2612_s23 }
  0x43   : > { %s586_s30 = sshll.u32 %s3429_s27, 4  ;;  %s2614_s15 = scalar_lea.hbm %s2613_s23, 1  ;;  %s587_s30 = int_to_ptr.hbm [resolvable:$true] %s586_s30 }
  0x44   : > { %2355 = dma.hbm_to_vmem [thread:$0]  (!%p2919_p8), %s587_s30, 16, %s589_s16, [#allocation7]  }
  0x45   : > { %p2615_p2 = scmp.ne.s32.totalorder %s2613_s23, %s2614_s15  ;;  %s2619_s19 = scalar_lea.hbm %s3385_s8, 2 }
  0x46   : > { %p2620_p8 = scmp.lt.s32.totalorder %s2613_s23, %s3385_s8  ;;  %p2621_p10 = scmp.lt.s32.totalorder %s2619_s19, %s2614_s15 }
  0x47   : > { %p2617_p7 = pnand %p2615_p2, %p2526_p3 }
  0x48   : > { %p2622_p11 = por %p2621_p10, %p2620_p8 }
  0x49   : > { %p2618_p9 = pneg %p2617_p7 }
  0x4b   : > { %p2623_p12 = pnand %p2622_p11, %p2618_p9 }
  0x4d   : > { %2626 = shalt.err (!%p2623_p12)
}
  0x4e   : > { %2362 = dma.hbm_to_vmem [thread:$0]  (!%p2947_p0), %s659_s18, 16, %s661_s11, %s2954_s20  }
  0x4f   : > { %s707_s13 = scalar_lea.hbm %s3391_s14, %s2750_s24  ;;  %s704_s17 = scalar_lea.vmem [#allocation12], %s2940_s29 }
  0x50   : > { %s711_s16 = sshll.u32 %s704_s17, 4  ;;  %s709_s1 = sshll.u32 %s707_s13, 4  ;;  %s712_s16 = int_to_ptr.vmem [resolvable:$true] %s711_s16  ;;  %s710_s1 = int_to_ptr.hbm [resolvable:$true] %s709_s1 }
  0x51   : > { %s702_s3 = scalar_lea.sflag [#allocation13], %s2940_s29  ;;  %s2642_s21 = sshra.s32 %s710_s1, 4  ;;  %s2643_s21 = int_to_ptr.hbm [resolvable:$true] %s2642_s21 }
  0x52   : > { %s2644_s23 = scalar_lea.hbm %s2643_s21, 1  ;;  %s2649_s20 = scalar_lea.hbm %s3391_s14, 2 }
  0x53   : > { %p2645_p13 = scmp.ne.s32.totalorder %s2643_s21, %s2644_s23  ;;  %p2650_p9 = scmp.lt.s32.totalorder %s2643_s21, %s3391_s14 }
  0x54   : > { %p2651_p8 = scmp.lt.s32.totalorder %s2649_s20, %s2644_s23 }
  0x55   : > { %p2647_p2 = pnand %p2645_p13, %p2526_p3 }
  0x56   : > { %p2652_p10 = por %p2651_p8, %p2650_p9 }
  0x57   : > { %p2648_p7 = pneg %p2647_p2 }
  0x59   : > { %p2653_p11 = pnand %p2652_p10, %p2648_p7 }
  0x5b   : > { %2656 = shalt.err (!%p2653_p11)
}
  0x5c   : > { %2365 = dma.hbm_to_vmem [thread:$0]  (!%p2947_p0), %s710_s1, 16, %s712_s16, %s702_s3  }
  0x5d   : > { %726 = sbr.rel (%p2911_p6) target bundleno = 3872 (0xf20), region = 100 }
  0x62   : > { %2717 = dma.done.wait (%p170_p1), [#allocation4], 256  }
  0x63   : > { %2719 = vsyncadd (%p170_p1), [#allocation4], 4294967040 }
  0x64   : > { %2721 = dma.done.wait (%p170_p1), [#allocation7], 32  }
  0x65   : > { %2723 = vsyncadd (%p170_p1), [#allocation7], 4294967264  ;;  %s743_s29 = sand.u32 1, %s2895_s2   ;;  %s3023_s28 = sand.u32 1, %s2742_s22  }
  0x66   : > { %s744_s4 = scalar_lea.sflag [#allocation10], %s743_s29 }
  0x67   : > { %2725 = dma.done.wait (%p2904_p5), %s744_s4, 32  }
  0x68   : > { %2727 = vsyncadd (%p2904_p5), %s744_s4, 4294967264  ;;  %s762_s19 = scalar_lea.sflag [#allocation13], %s3023_s28 }
  0x69   : > { %2729 = dma.done.wait (%p2904_p5), %s762_s19, 16  }
  0x6a   : > { %2731 = vsyncadd (%p2904_p5), %s762_s19, 4294967280  ;;  %p859_p1 = scmp.lt.s32.totalorder %s2895_s2, 1  ;;  %s3430_s1 = sld [smem:[#allocation27_spill]] }
  0x6b   : > { %s3431_s6 = sld [smem:[#allocation29_spill]] }
  0x6c   : > { %s3039_s0 = scalar_select %p859_p1, %s2895_s2, 1 }
  0x6d   : > { %s3432_s13 = sld [smem:[#allocation30_spill]] }
  0x6e   : > { %s2316_s5 = sshll.u32 %s3039_s0, 5  ;;  %s2319_s25 = sshll.u32 %s3039_s0, 6 }
  0x6f   : > { %s3063_s4 = scalar_lea.vmem %s3387_s10, %s2316_s5  ;;  %s3433_s26 = sld [smem:[#allocation31_spill]] }
  0x70   : > { %s3049_s3 = scalar_lea.vmem %s3430_s1, %s2316_s5  ;;  %s3434_s12 = sld [smem:[#allocation32_spill]] }
  0x71   : > { %s3054_s15 = scalar_lea.vmem %s3431_s6, %s2316_s5  ;;  %s3435_s6 = sld [smem:[#allocation33_spill]] }
  0x73   : > { %s882_s16 = scalar_lea.vmem %s3432_s13, %s3039_s0  ;;  %897 = sbr.rel (%p2254_p4) target bundleno = 398 (0x18e), region = 128 }
  0x75   : > { %s3073_s21 = scalar_lea.vmem %s3433_s26, %s2319_s25 }
  0x76   : > { %s890_s11 = scalar_lea.vmem %s3434_s12, %s3039_s0 }
  0x77   : > { %s893_s24 = scalar_lea.vmem %s3435_s6, %s3039_s0 }
  0x78   : > { %v898_v0 = vld [vmem:[#allocation3] sm:$0xff]  ;;  %vm902_vm0 = vcmask 261120   ;;  %v899_v2 = vld [vmem:[#allocation3 + $0x8] sm:$0xff]  ;;  %v2757_v4 = vmov 32.0   ;;  %v2426_v35 = vld [vmem:[#allocation6] ss:$0 sm:$0xff] }
  0x79   : > { %v903_v1 = vsel %vm902_vm0, %v898_v0, 0.0  ;;  %v906_v3 = vsel %vm902_vm0, %v899_v2, 0.0  ;;  %2428 = vrcp.f32 %v2757_v4  ;;  %v2427_v38 = vld [vmem:[#allocation8] ss:$0 sm:$0xff] }
  0x7a   : > { %904 = vadd.xlane.f32.xlu0 %v903_v1 }
  0x7f   : > { %v2429_v5 = vpop.eup %2428 }
  0x80   : > { %v910_v6 = vmul.f32 32.0, %v2429_v5  ;;  %vm914_vm1 = vweird.f32 %v2429_v5 }
  0x82   : > { %907 = vadd.xlane.f32.xlu0 %v906_v3  ;;  %v911_v7 = vsub.f32 1.0, %v910_v6 }
  0x84   : > { %v912_v8 = vmul.f32 %v2429_v5, %v911_v7 }
  0x86   : > { %v913_v9 = vadd.f32 %v2429_v5, %v912_v8 }
  0x88   : > { %v915_v10 = vsel %vm914_vm1, %v2429_v5, %v913_v9 }
  0xed   : > { %v905_v11 = vpop.xlane.xlu0 %904 }
  0xee   : > { %v916_v12 = vmul.f32 %v915_v10, %v905_v11 }
  0xf0   : > { %v918_v13 = vsub.f32 %v898_v0, %v916_v12 }
  0xf2   : > { %v920_v14 = vmul.f32 %v918_v13, %v918_v13 }
  0xf4   : > { %v922_v15 = vsel %vm902_vm0, %v920_v14, 0.0 }
  0xf5   : > { %923 = vadd.xlane.f32.xlu1 %v922_v15  ;;  %v908_v16 = vpop.xlane.xlu0 %907 }
  0xf6   : > { %v917_v17 = vmul.f32 %v915_v10, %v908_v16 }
  0xf8   : > { %v919_v18 = vsub.f32 %v899_v2, %v917_v17 }
  0xfa   : > { %v921_v19 = vmul.f32 %v919_v18, %v919_v18 }
  0xfc   : > { %v925_v20 = vsel %vm902_vm0, %v921_v19, 0.0 }
  0xfd   : > { %926 = vadd.xlane.f32.xlu1 %v925_v20 }
 0x168   : > { %v924_v21 = vpop.xlane.xlu1 %923 }
 0x169   : > { %v928_v22 = vmul.f32 %v924_v21, %v915_v10 }
 0x16b   : > { %v930_v23 = vadd.f32 1e-12, %v928_v22 }
 0x16d   : > { %2430 = vrsqrt.f32 %v930_v23  ;;  %vm938_vm3 = vweird.f32 %v930_v23 }
 0x170   : > { %v927_v24 = vpop.xlane.xlu1 %926 }
 0x171   : > { %v929_v25 = vmul.f32 %v927_v24, %v915_v10 }
 0x173   : > { %v2431_v26 = vpop.eup %2430  ;;  %v931_v27 = vadd.f32 1e-12, %v929_v25 }
 0x174   : > { %v933_v28 = vmul.f32 %v2431_v26, %v930_v23  ;;  %vm939_vm2 = vweird.f32 %v2431_v26 }
 0x175   : > { %2432 = vrsqrt.f32 %v931_v27  ;;  %vm940_vm4 = vmor %vm938_vm3, %vm939_vm2  ;;  %vm948_vm6 = vweird.f32 %v931_v27 }
 0x176   : > { %v934_v29 = vmul.f32 %v2431_v26, %v933_v28 }
 0x178   : > { %v935_v30 = vmul.f32 0.5, %v934_v29 }
 0x17a   : > { %v936_v31 = vsub.f32 1.5, %v935_v30 }
 0x17b   : > { %v2433_v32 = vpop.eup %2432 }
 0x17c   : > { %v937_v33 = vmul.f32 %v2431_v26, %v936_v31  ;;  %v943_v34 = vmul.f32 %v2433_v32, %v931_v27  ;;  %vm949_vm5 = vweird.f32 %v2433_v32 }
 0x17d   : > { %vm950_vm7 = vmor %vm948_vm6, %vm949_vm5 }
 0x17e   : > { %v941_v36 = vsel %vm940_vm4, %v2431_v26, %v937_v33  ;;  %v944_v37 = vmul.f32 %v2433_v32, %v943_v34 }
 0x17f   : > { %v952_v39 = vmul.f32 %v941_v36, %v918_v13 }
 0x180   : > { %v945_v40 = vmul.f32 0.5, %v944_v37 }
 0x181   : > { %v957_v41 = vmul.f32 %v2426_v35, %v952_v39 }
 0x182   : > { %v946_v42 = vsub.f32 1.5, %v945_v40 }
 0x183   : > { %v962_v43 = vadd.f32 %v2427_v38, %v957_v41 }
 0x184   : > { %v947_v44 = vmul.f32 %v2433_v32, %v946_v42 }
 0x185   : > { %964 = vst.msk [vmem:[#allocation2] sm:$0xff] %vm902_vm0, %v962_v43 }
 0x186   : > { %v951_v45 = vsel %vm950_vm7, %v2433_v32, %v947_v44 }
 0x187   : > { %v953_v46 = vmul.f32 %v951_v45, %v919_v18 }
 0x189   : > { %v958_v47 = vmul.f32 %v2426_v35, %v953_v46 }
 0x18b   : > { %v963_v48 = vadd.f32 %v2427_v38, %v958_v47 }
 0x18d   : > { %965 = vst.msk [vmem:[#allocation2 + $0x8] sm:$0xff] %vm902_vm0, %v963_v48 }
 0x18e PF: > { %v971_v49 = vld [vmem:[%s3049_s3 + $0x18] sm:$0xff]  ;;  %v970_v50 = vld [vmem:[%s3049_s3 + $0x10] sm:$0xff]  ;;  %v969_v51 = vld [vmem:[%s3049_s3 + $0x8] sm:$0xff]  ;;  %vm976_vm8 = vcmask 261120   ;;  %s3436_s6 = scalar_lea.vmem [#allocation9], %s3023_s28  ;;  %s2758_s12 = smov 120  }
 0x18f   : > { %995 = vmatpush.msra.mxu0 %v971_v49  ;;  %2320 = vmatpush.msra.mxu2 %v971_v49  ;;  %v968_v52 = vld [vmem:[%s3049_s3] sm:$0xff]  ;;  %s2759_s26 = smov 96   ;;  %s2760_s27 = smov 88   ;;  %vm1014_vm9 = vcmask 64512   ;;  %v1008_v30 = vld [vmem:[%s3054_s15 + $0x8] sm:$0xff]  ;;  %v1009_v33 = vld [vmem:[%s3054_s15 + $0x10] sm:$0xff] }
 0x190   : > { %v3095_v53 = vld [vmem:[#allocation2] sm:$0xff]  ;;  %s3437_s3 = sld [smem:[#allocation24_spill]]  ;;  %s2761_s18 = smov 112   ;;  %vm1874_vm14 = vcmask 523264  }
 0x191   : > { %996 = vmatpush.msra.mxu0 %v970_v50  ;;  %2321 = vmatpush.msra.mxu2 %v970_v50  ;;  %v2434_v54 = vld [vmem:[%s3436_s6] ss:$0 sm:$0xff]  ;;  %s2762_s29 = smov 72   ;;  %s2763_s19 = smov 64  }
 0x192   : > { %s2764_s30 = smov 56   ;;  %s2765_s13 = smov 80   ;;  %v1007_v29 = vld [vmem:[%s3054_s15] sm:$0xff] }
 0x193   : > { %997 = vmatpush.msra.mxu0 %v969_v51  ;;  %2322 = vmatpush.msra.mxu2 %v969_v51  ;;  %s2766_s25 = smov 48   ;;  %s2767_s1 = smov 104  }
 0x194   : > { %v3108_v57 = vld [vmem:[#allocation2 + $0x8] sm:$0xff]  ;;  %s2768_s23 = smov 40   ;;  %s3438_s6 = scalar_lea.vmem %s3384_s7, %s3039_s0 }
 0x195   : > { %998 = vmatpush.msra.mxu0 %v968_v52  ;;  %2323 = vmatpush.msra.mxu2 %v968_v52  ;;  %p2309_p4 = scmp.ne.s32.totalorder %s2895_s2, 1 }
 0x196   : > { %2271 = vmatmul.msk.f32.vlgmr.msra.gmra.mxu0 %vm976_vm8, %v3095_v53  ;;  %2272 = vmatmul.msk.f32.vlgmr.msra.gmra.mxu2 %vm976_vm8, %v3108_v57  ;;  %v3120_v61 = vld [vmem:[%s3437_s3] sm:$0x3] }
 0x197   : > { %v3123_v62 = vperm.slane %v3120_v61, 0 }
 0x213   : > { %v1000_v55 = vpop.f32.mrf.mxu0 }
 0x214   : > { %v3101_v56 = vadd.f32 %v2434_v54, %v1000_v55 }
 0x216   : > { %1079 = vrot.lane.b32.xlu1 %v3101_v56, %s2758_s12  ;;  %1012 = vrot.lane.b32.xlu0 %v3101_v56, %s2759_s26 }
 0x219   : > { %v1003_v7 = vpop.f32.mrf.mxu2 }
 0x21a   : > { %v3131_v8 = vadd.f32 %v2434_v54, %v1003_v7 }
 0x21e   : > { %1081 = vrot.lane.b32.xlu0 %v3101_v56, %s2760_s27 }
 0x288   : > { %v1013_v58 = vpop.permute.xlu0 %1012  ;;  %v1080_v60 = vpop.permute.xlu1 %1079 }
 0x289   : > { %2273 = vmatpush.xpose.msk.msra.mxu1 %vm1014_vm9, %v1013_v58 }
 0x28c   : > { %2274 = vmatmul.msk.f32.vlgmr.msra.gmra.mxu1 %vm1014_vm9, %v3101_v56 }
 0x28d   : > { %1164 = vmatpush.msrb.mxu1 %v1008_v30 }
 0x290   : > { %v1082_v59 = vpop.permute.xlu0 %1081 }
 0x291   : > { %2276 = vmatpush.xpose.msk.msra.mxu3 %vm1014_vm9, %v1082_v59 }
 0x294   : > { %2277 = vmatmul.msk.f32.vlgmr.msra.gmra.mxu3 %vm1014_vm9, %v1080_v60 }
 0x295   : > { %1187 = vmatpush.msrb.mxu3 %v1007_v29 }
 0x297   : > { %1277 = vmatpush.msra.mxu3 %v1009_v33 }
 0x309   : > { %v1036_v63 = vpop.f32.mrf.mxu1 }
 0x30a   : > { %v1039_v0 = vmul.f32 0.35355338, %v1036_v63 }
 0x30c   : > { %v1041_v1 = vadd.f32 %v3123_v62, %v1039_v0 }
 0x30e   : > { %v1042_v2 = vsel %vm1014_vm9, %v1041_v1, -inf }
 0x30f   : > { %1043 = vmax.xlane.f32.xlu1 %v1042_v2  ;;  %v3180_v2 = vperm.slane %v3120_v61, 1 }
 0x317   : > { %v1104_v3 = vpop.f32.mrf.mxu3 }
 0x318   : > { %v1107_v4 = vmul.f32 0.35355338, %v1104_v3 }
 0x31a   : > { %v1108_v5 = vadd.f32 %v1107_v4, %v3123_v62 }
 0x31c   : > { %v1109_v6 = vsel %vm1014_vm9, %v1108_v5, -inf }
 0x31d   : > { %1110 = vmax.xlane.f32.xlu2 %v1109_v6 }
 0x328   : > { %1192 = vrot.lane.b32.xlu1 %v3101_v56, %s2761_s18 }
 0x330   : > { %1375 = vrot.lane.b32.xlu1 %v3131_v8, %s2759_s26  ;;  %s3447_s26 = sld [smem:[#allocation36_spill]] (!%p2309_p4) }
 0x338   : > { %1285 = vrot.lane.b32.xlu1 %v3101_v56, %s2762_s29 }
 0x382   : > { %v1044_v9 = vpop.xlane.xlu1 %1043 }
 0x383   : > { %v1045_v10 = vsub.f32 %v1041_v1, %v1044_v9 }
 0x385   : > { %v1046_v11 = vmul.f32 1.442695, %v1045_v10 }
 0x387   : > { %2442 = vpow2.f32 %v1046_v11 }
 0x38d   : > { %v2443_v12 = vpop.eup %2442 }
 0x38e   : > { %v1048_v13 = vsel %vm1014_vm9, %v2443_v12, 0.0 }
 0x38f   : > { %1049 = vadd.xlane.f32.xlu2 %v1048_v13 }
 0x390   : > { %v1111_v14 = vpop.xlane.xlu2 %1110 }
 0x391   : > { %v1112_v15 = vsub.f32 %v1108_v5, %v1111_v14 }
 0x393   : > { %v1113_v16 = vmul.f32 1.442695, %v1112_v15 }
 0x395   : > { %2444 = vpow2.f32 %v1113_v16 }
 0x39a   : > { %v1193_v28 = vpop.permute.xlu1 %1192 }
 0x39b   : > { %v2445_v17 = vpop.eup %2444 }
 0x39c   : > { %v1115_v18 = vsel %vm1014_vm9, %v2445_v17, 0.0 }
 0x39d   : > { %1116 = vadd.xlane.f32.xlu0 %v1115_v18 }
 0x3a2   : > { %v1376_v34 = vpop.permute.xlu1 %1375 }
 0x3a7   : > { %1053 = vrot.lane.b32.xlu2 %v3101_v56, %s2763_s19 }
 0x3aa   : > { %v1286_v49 = vpop.permute.xlu1 %1285 }
 0x3af   : > { %1120 = vrot.lane.b32.xlu2 %v3101_v56, %s2764_s30 }
 0x3b7   : > { %1194 = vrot.lane.b32.xlu2 %v3101_v56, %s2765_s13 }
 0x402   : > { %v1050_v19 = vpop.xlane.xlu2 %1049 }
 0x403   : > { %2446 = vrcp.f32 %v1050_v19 }
 0x409   : > { %v2447_v20 = vpop.eup %2446 }
 0x40a   : > { %v1054_v21 = vpop.permute.xlu2 %1053  ;;  %v1052_v22 = vmul.f32 %v2447_v20, %v2443_v12 }
 0x40b   : > { %1074 = vmatpush.msrb.mxu2 %v1054_v21 }
 0x40c   : > { %2275 = vmatmul.msk.f32.vlgmr.msrb.gmra.mxu2 %vm1014_vm9, %v1052_v22 }
 0x410   : > { %v1117_v23 = vpop.xlane.xlu0 %1116 }
 0x411   : > { %2448 = vrcp.f32 %v1117_v23 }
 0x412   : > { %v1121_v24 = vpop.permute.xlu2 %1120 }
 0x413   : > { %1141 = vmatpush.msra.mxu2 %v1121_v24 }
 0x417   : > { %v2449_v25 = vpop.eup %2448 }
 0x418   : > { %v1119_v26 = vmul.f32 %v2449_v25, %v2445_v17  ;;  %v3206_v25 = vld [vmem:[%s3054_s15 + $0x18] sm:$0xff] }
 0x41a   : > { %2278 = vmatmul.msk.f32.vlgmr.msra.gmra.mxu2 %vm1014_vm9, %v1119_v26  ;;  %v1195_v27 = vpop.permute.xlu2 %1194 }
 0x41b   : > { %2281 = vmatpush.xpose.msk.msrb.mxu2 %vm1014_vm9, %v1195_v27 }
 0x422   : > { %2282 = vmatmul.msk.f32.vlgmr.msrb.gmra.mxu2 %vm1014_vm9, %v1193_v28 }
 0x48f   : > { %v1076_v31 = vpop.f32.mrf.mxu2 }
 0x490   : > { %2280 = vmatmul.msk.f32.vlgmr.msrb.gmra.mxu3 %vm1014_vm9, %v1076_v31 }
 0x491   : > { %2289 = vmatpush.xpose.msk.msrb.mxu3 %vm1014_vm9, %v1376_v34 }
 0x49d   : > { %v1143_v32 = vpop.f32.mrf.mxu2 }
 0x49e   : > { %2279 = vmatmul.msk.f32.vlgmr.msrb.gmra.mxu1 %vm1014_vm9, %v1143_v32 }
 0x4a5   : > { %v1217_v35 = vpop.f32.mrf.mxu2 }
 0x4a6   : > { %v1220_v36 = vmul.f32 0.35355338, %v1217_v35 }
 0x4a8   : > { %v1221_v37 = vadd.f32 %v1220_v36, %v3123_v62 }
 0x4aa   : > { %v1222_v38 = vsel %vm1014_vm9, %v1221_v37, -inf }
 0x4ab   : > { %1223 = vmax.xlane.f32.xlu2 %v1222_v38 }
 0x4c3   : > { %1415 = vrot.lane.b32.xlu2 %v3131_v8, %s2763_s19 }
 0x513   : > { %v3175_v60 = vpop.f32.mrf.mxu3 }
 0x51b   : > { %v3166_v51 = vpop.f32.mrf.mxu1 }
 0x51e   : > { %v1224_v39 = vpop.xlane.xlu2 %1223 }
 0x51f   : > { %v1225_v40 = vsub.f32 %v1221_v37, %v1224_v39 }
 0x521   : > { %v1226_v41 = vmul.f32 1.442695, %v1225_v40 }
 0x523   : > { %2450 = vpow2.f32 %v1226_v41 }
 0x526   : > { %v1416_v42 = vpop.permute.xlu2 %1415 }
 0x527   : > { %1436 = vmatpush.msrb.mxu0 %v1416_v42 }
 0x529   : > { %1549 = vmatpush.msra.mxu0 %v1007_v29  ;;  %v2451_v43 = vpop.eup %2450 }
 0x52a   : > { %v1228_v44 = vsel %vm1014_vm9, %v2451_v43, 0.0 }
 0x52b   : > { %1229 = vadd.xlane.f32.xlu0 %v1228_v44 }
 0x53f   : > { %1233 = vrot.lane.b32.xlu0 %v3101_v56, %s2766_s25 }
 0x547   : > { %1283 = vrot.lane.b32.xlu0 %v3101_v56, %s2767_s1 }
 0x59e   : > { %v1230_v45 = vpop.xlane.xlu0 %1229 }
 0x59f   : > { %2452 = vrcp.f32 %v1230_v45 }
 0x5a5   : > { %v2453_v46 = vpop.eup %2452 }
 0x5a6   : > { %v1232_v47 = vmul.f32 %v2453_v46, %v2451_v43 }
 0x5b1   : > { %v1234_v48 = vpop.permute.xlu0 %1233 }
 0x5b2   : > { %1254 = vmatpush.msra.mxu1 %v1234_v48 }
 0x5b3   : > { %2283 = vmatmul.msk.f32.vlgmr.msra.gmra.mxu1 %vm1014_vm9, %v1232_v47 }
 0x5b4   : > { %2285 = vmatpush.xpose.msk.msrb.mxu1 %vm1014_vm9, %v1286_v49 }
 0x5b8   : > { %1368 = vmatpush.msra.mxu1 %v3206_v25 }
 0x5b9   : > { %v1284_v50 = vpop.permute.xlu0 %1283 }
 0x5bb   : > { %2286 = vmatmul.msk.f32.vlgmr.msrb.gmra.mxu1 %vm1014_vm9, %v1284_v50 }
 0x630   : > { %v1256_v52 = vpop.f32.mrf.mxu1 }
 0x631   : > { %2284 = vmatmul.msk.f32.vlgmr.msra.gmra.mxu3 %vm1014_vm9, %v1256_v52 }
 0x632   : > { %1526 = vmatpush.msra.mxu3 %v1008_v30 }
 0x638   : > { %v1308_v54 = vpop.f32.mrf.mxu1 }
 0x639   : > { %v1311_v55 = vmul.f32 0.35355338, %v1308_v54  ;;  %2290 = vmatmul.msk.f32.vlgmr.msrb.gmra.mxu3 %vm1014_vm9, %v3131_v8  ;;  %v1190_v54 = vadd.f32 %v3175_v60, %v3166_v51 }
 0x63a   : > { %1639 = vmatpush.msrb.mxu3 %v1009_v33 }
 0x63b   : > { %v1312_v58 = vadd.f32 %v1311_v55, %v3123_v62 }
 0x63d   : > { %v1313_v59 = vsel %vm1014_vm9, %v1312_v58, -inf }
 0x63e   : > { %1314 = vmax.xlane.f32.xlu2 %v1313_v59 }
 0x656   : > { %1556 = vrot.lane.b32.xlu2 %v3131_v8, %s2765_s13 }
 0x6b1   : > { %v1315_v0 = vpop.xlane.xlu2 %1314 }
 0x6b2   : > { %v1316_v1 = vsub.f32 %v1312_v58, %v1315_v0  ;;  %v3234_v0 = vld [vmem:[%s3438_s6] ss:$0 sm:$0xff] }
 0x6b4   : > { %v3177_v63 = vpop.f32.mrf.mxu3  ;;  %v1317_v3 = vmul.f32 1.442695, %v1316_v1 }
 0x6b5   : > { %v1282_v58 = vadd.f32 %v3177_v63, %v1190_v54  ;;  %v1867_v54 = vld [vmem:[%s3073_s21 + $0x28] sm:$0xff] }
 0x6b6   : > { %2454 = vpow2.f32 %v1317_v3 }
 0x6b9   : > { %v1557_v22 = vpop.permute.xlu2 %1556 }
 0x6bc   : > { %v1398_v4 = vpop.f32.mrf.mxu3  ;;  %v2455_v7 = vpop.eup %2454 }
 0x6bd   : > { %v1401_v5 = vmul.f32 0.35355338, %v1398_v4  ;;  %v1319_v9 = vsel %vm1014_vm9, %v2455_v7, 0.0 }
 0x6bf   : > { %v1403_v62 = vadd.f32 %v3180_v2, %v1401_v5 }
 0x6c1   : > { %v1404_v6 = vsel %vm1014_vm9, %v1403_v62, -inf }
 0x6c2   : > { %1405 = vmax.xlane.f32.xlu1 %v1404_v6 }
 0x6ca   : > { %1320 = vadd.xlane.f32.xlu1 %v1319_v9 }
 0x6e3   : > { %1443 = vrot.lane.b32.xlu1 %v3131_v8, %s2760_s27  ;;  %s3440_s27 = scalar_lea.vmem %s3386_s9, %s3039_s0 }
 0x6eb   : > { %1647 = vrot.lane.b32.xlu1 %v3131_v8, %s2762_s29  ;;  %s3448_s29 = sld [smem:[#allocation35_spill]] (!%p2309_p4) }
 0x735   : > { %v1406_v61 = vpop.xlane.xlu1 %1405 }
 0x736   : > { %v1407_v10 = vsub.f32 %v1403_v62, %v1406_v61 }
 0x738   : > { %v1408_v11 = vmul.f32 1.442695, %v1407_v10 }
 0x73a   : > { %2456 = vpow2.f32 %v1408_v11 }
 0x73d   : > { %v1321_v14 = vpop.xlane.xlu1 %1320 }
 0x740   : > { %v2457_v12 = vpop.eup %2456 }
 0x741   : > { %v1410_v13 = vsel %vm1014_vm9, %v2457_v12, 0.0 }
 0x742   : > { %1411 = vadd.xlane.f32.xlu0 %v1410_v13 }
 0x755   : > { %v1444_v15 = vpop.permute.xlu1 %1443 }
 0x756   : > { %1324 = vrot.lane.b32.xlu0 %v3101_v56, %s2768_s23 }
 0x75d   : > { %v1648_v19 = vpop.permute.xlu1 %1647 }
 0x75e   : > { %1441 = vrot.lane.b32.xlu0 %v3131_v8, %s2758_s12  ;;  %s3439_s12 = scalar_lea.vmem [#allocation11], %s3023_s28 }
 0x766   : > { %1554 = vrot.lane.b32.xlu0 %v3131_v8, %s2761_s18 }
 0x76e   : > { %1645 = vrot.lane.b32.xlu0 %v3131_v8, %s2767_s1 }
 0x7b5   : > { %v1412_v16 = vpop.xlane.xlu0 %1411 }
 0x7b6   : > { %2458 = vrcp.f32 %v1412_v16 }
 0x7b7   : > { %2460 = vrcp.f32 %v1321_v14 }
 0x7bc   : > { %v2459_v17 = vpop.eup %2458 }
 0x7bd   : > { %v1414_v18 = vmul.f32 %v2459_v17, %v2457_v12  ;;  %v2461_v56 = vpop.eup %2460  ;;  %v2769_v12 = vmov 32.0  }
 0x7be   : > { %v1323_v20 = vmul.f32 %v2461_v56, %v2455_v7 }
 0x7bf   : > { %2291 = vmatmul.msk.f32.vlgmr.msrb.gmra.mxu0 %vm1014_vm9, %v1414_v18 }
 0x7c0   : > { %2301 = vmatpush.xpose.msk.msrb.mxu0 %vm1014_vm9, %v1648_v19 }
 0x7c8   : > { %v1325_v21 = vpop.permute.xlu0 %1324 }
 0x7c9   : > { %1345 = vmatpush.msra.mxu2 %v1325_v21 }
 0x7ca   : > { %2287 = vmatmul.msk.f32.vlgmr.msra.gmra.mxu2 %vm1014_vm9, %v1323_v20 }
 0x7cb   : > { %2292 = vmatpush.xpose.msk.msrb.mxu2 %vm1014_vm9, %v1444_v15 }
 0x7cf   : > { %2297 = vmatpush.xpose.msk.msra.mxu2 %vm1014_vm9, %v1557_v22 }
 0x7d0   : > { %v1442_v23 = vpop.permute.xlu0 %1441 }
 0x7d2   : > { %2293 = vmatmul.msk.f32.vlgmr.msrb.gmra.mxu2 %vm1014_vm9, %v1442_v23 }
 0x7d8   : > { %v1555_v24 = vpop.permute.xlu0 %1554 }
 0x7da   : > { %2298 = vmatmul.msk.f32.vlgmr.msra.gmra.mxu2 %vm1014_vm9, %v1555_v24 }
 0x7e0   : > { %v1646_v27 = vpop.permute.xlu0 %1645 }
 0x83c   : > { %v1438_v26 = vpop.f32.mrf.mxu0 }
 0x83d   : > { %2296 = vmatmul.msk.f32.vlgmr.msra.gmra.mxu0 %vm1014_vm9, %v1438_v26 }
 0x845   : > { %2302 = vmatmul.msk.f32.vlgmr.msrb.gmra.mxu0 %vm1014_vm9, %v1646_v27 }
 0x84d   : > { %v1347_v28 = vpop.f32.mrf.mxu2 }
 0x84e   : > { %2288 = vmatmul.msk.f32.vlgmr.msra.gmra.mxu1 %vm1014_vm9, %v1347_v28  ;;  %v1810_v28 = vld [vmem:[%s3063_s4 + $0x18] sm:$0xff] }
 0x855   : > { %v1466_v29 = vpop.f32.mrf.mxu2 }
 0x856   : > { %v1469_v30 = vmul.f32 0.35355338, %v1466_v29  ;;  %v1809_v29 = vld [vmem:[%s3063_s4 + $0x10] sm:$0xff] }
 0x858   : > { %v1470_v31 = vadd.f32 %v1469_v30, %v3180_v2  ;;  %v1808_v30 = vld [vmem:[%s3063_s4 + $0x8] sm:$0xff] }
 0x85a   : > { %v1471_v32 = vsel %vm1014_vm9, %v1470_v31, -inf }
 0x85b   : > { %1472 = vmax.xlane.f32.xlu1 %v1471_v32 }
 0x85d   : > { %v1579_v33 = vpop.f32.mrf.mxu2 }
 0x85e   : > { %v1582_v34 = vmul.f32 0.35355338, %v1579_v33 }
 0x860   : > { %v1583_v35 = vadd.f32 %v1582_v34, %v3180_v2 }
 0x862   : > { %v1584_v36 = vsel %vm1014_vm9, %v1583_v35, -inf }
 0x863   : > { %1585 = vmax.xlane.f32.xlu0 %v1584_v36 }
 0x8ba   : > { %v3216_v37 = vpop.f32.mrf.mxu0 }
 0x8c2   : > { %v1670_v38 = vpop.f32.mrf.mxu0 }
 0x8c3   : > { %v1673_v39 = vmul.f32 0.35355338, %v1670_v38 }
 0x8c5   : > { %v1674_v40 = vadd.f32 %v1673_v39, %v3180_v2 }
 0x8c7   : > { %v1675_v41 = vsel %vm1014_vm9, %v1674_v40, -inf }
 0x8c8   : > { %1676 = vmax.xlane.f32.xlu2 %v1675_v41 }
 0x8cb   : > { %v1370_v55 = vpop.f32.mrf.mxu1 }
 0x8cc   : > { %v1373_v59 = vadd.f32 %v1370_v55, %v1282_v58  ;;  %v1866_v55 = vld [vmem:[%s3073_s21 + $0x20] sm:$0xff]  ;;  %v1865_v58 = vld [vmem:[%s3073_s21 + $0x18] sm:$0xff] }
 0x8ce   : > { %v1473_v42 = vpop.xlane.xlu1 %1472  ;;  %v1740_v1 = vadd.f32 %v3234_v0, %v1373_v59  ;;  %v1864_v59 = vld [vmem:[%s3073_s21 + $0x10] sm:$0xff] }
 0x8cf   : > { %v1474_v43 = vsub.f32 %v1470_v31, %v1473_v42  ;;  %v1807_v31 = vld [vmem:[%s3063_s4] sm:$0xff] }
 0x8d0   : > { %v1742_v2 = vadd.f32 %v1740_v1, %v3095_v53  ;;  %v3259_v42 = vld [vmem:[%s3439_s12] ss:$0 sm:$0xff]  ;;  %v1863_v1 = vld [vmem:[%s3073_s21 + $0x8] sm:$0xff] }
 0x8d1   : > { %v1475_v44 = vmul.f32 1.442695, %v1474_v43 }
 0x8d2   : > { %v1746_v3 = vsel %vm976_vm8, %v1742_v2, 0.0 }
 0x8d3   : > { %2462 = vpow2.f32 %v1475_v44 }
 0x8d6   : > { %v1586_v45 = vpop.xlane.xlu0 %1585 }
 0x8d7   : > { %v1587_v46 = vsub.f32 %v1583_v35, %v1586_v45  ;;  %v3266_v45 = vld [vmem:[%s3440_s27] ss:$0 sm:$0xff] }
 0x8d9   : > { %v2463_v47 = vpop.eup %2462  ;;  %v1588_v48 = vmul.f32 1.442695, %v1587_v46 }
 0x8da   : > { %v1477_v49 = vsel %vm1014_vm9, %v2463_v47, 0.0 }
 0x8db   : > { %2464 = vpow2.f32 %v1588_v48  ;;  %1478 = vadd.xlane.f32.xlu1 %v1477_v49  ;;  %v1869_v49 = vld [vmem:[%s3073_s21 + $0x38] sm:$0xff] }
 0x8dc   : > { %1889 = vmatpush.msra.mxu0 %v1869_v49 }
 0x8e1   : > { %v2465_v50 = vpop.eup %2464 }
 0x8e2   : > { %v1590_v52 = vsel %vm1014_vm9, %v2465_v50, 0.0 }
 0x8e3   : > { %1591 = vadd.xlane.f32.xlu0 %v1590_v52 }
 0x8f4   : > { %1482 = vrot.lane.b32.xlu1 %v3131_v8, %s2764_s30 }
 0x8f7   : > { %1595 = vrot.lane.b32.xlu0 %v3131_v8, %s2766_s25 }
 0x91e   : > { %1747 = vadd.xlane.f32.xlu1 %v1746_v3  ;;  %v1862_v3 = vld [vmem:[%s3073_s21] sm:$0xff] }
 0x93b   : > { %v1677_v4 = vpop.xlane.xlu2 %1676 }
 0x93c   : > { %v1678_v5 = vsub.f32 %v1674_v40, %v1677_v4  ;;  %v3285_v4 = vld [vmem:[%s882_s16] ss:$0 sm:$0xff] }
 0x93e   : > { %v1679_v51 = vmul.f32 1.442695, %v1678_v5 }
 0x940   : > { %2466 = vpow2.f32 %v1679_v51 }
 0x946   : > { %v2467_v60 = vpop.eup %2466 }
 0x947   : > { %v1681_v63 = vsel %vm1014_vm9, %v2467_v60, 0.0 }
 0x948   : > { %1682 = vadd.xlane.f32.xlu2 %v1681_v63 }
 0x94e   : > { %v1479_v62 = vpop.xlane.xlu1 %1478 }
 0x94f   : > { %2468 = vrcp.f32 %v1479_v62 }
 0x955   : > { %v2469_v7 = vpop.eup %2468 }
 0x956   : > { %v1592_v6 = vpop.xlane.xlu0 %1591  ;;  %v1481_v53 = vmul.f32 %v2469_v7, %v2463_v47 }
 0x957   : > { %2470 = vrcp.f32 %v1592_v6 }
 0x958   : > { %2472 = vrcp.f32 %v2769_v12 }
 0x95d   : > { %v2471_v10 = vpop.eup %2470 }
 0x95e   : > { %v1594_v11 = vmul.f32 %v2471_v10, %v2465_v50  ;;  %v2473_v13 = vpop.eup %2472  ;;  %v1868_v50 = vld [vmem:[%s3073_s21 + $0x30] sm:$0xff] }
 0x95f   : > { %vm1757_vm10 = vweird.f32 %v2473_v13  ;;  %1890 = vmatpush.msra.mxu0 %v1868_v50 }
 0x960   : > { %1686 = vrot.lane.b32.xlu2 %v3131_v8, %s2768_s23  ;;  %v1753_v8 = vmul.f32 32.0, %v2473_v13 }
 0x961   : > { %1891 = vmatpush.msra.mxu0 %v1867_v54 }
 0x962   : > { %v1754_v14 = vsub.f32 1.0, %v1753_v8 }
 0x963   : > { %1892 = vmatpush.msra.mxu0 %v1866_v55 }
 0x964   : > { %v1755_v15 = vmul.f32 %v2473_v13, %v1754_v14 }
 0x965   : > { %1893 = vmatpush.msra.mxu0 %v1865_v58  ;;  %v2441_v58 = vld [vmem:[%s893_s24] ss:$0 sm:$0xff]  ;;  %s3445_s24 = sld [smem:[#allocation34_spill]] (!%p2309_p4) }
 0x966   : > { %v1483_v9 = vpop.permute.xlu1 %1482  ;;  %v1756_v16 = vadd.f32 %v2473_v13, %v1755_v15 }
 0x967   : > { %1503 = vmatpush.msrb.mxu1 %v1483_v9  ;;  %1894 = vmatpush.msra.mxu0 %v1864_v59 }
 0x968   : > { %2294 = vmatmul.msk.f32.vlgmr.msrb.gmra.mxu1 %vm1014_vm9, %v1481_v53  ;;  %v3245_v17 = vsel %vm1757_vm10, %v2473_v13, %v1756_v16 }
 0x969   : > { %v1596_v61 = vpop.permute.xlu0 %1595  ;;  %1895 = vmatpush.msra.mxu0 %v1863_v1 }
 0x96a   : > { %1616 = vmatpush.msra.mxu1 %v1596_v61 }
 0x96b   : > { %1896 = vmatpush.msra.mxu0 %v1862_v3  ;;  %s3446_s13 = smov (!%p2309_p4), %s3445_s24 }
 0x96c   : > { %1730 = vmatpush.msrb.mxu1 %v3206_v25 }
 0x970   : > { %2299 = vmatmul.msk.f32.vlgmr.msra.gmra.mxu1 %vm1014_vm9, %v1594_v11 }
 0x991   : > { %v1748_v18 = vpop.xlane.xlu1 %1747 }
 0x992   : > { %v1759_v19 = vmul.f32 %v3245_v17, %v1748_v18  ;;  %v3298_v18 = vld [vmem:[%s890_s11] ss:$0 sm:$0xff]  ;;  %s3443_s11 = scalar_lea.vmem [#allocation12], %s3023_s28  ;;  %s3449_s28 = sld [smem:[#allocation37_spill]] (!%p2309_p4) }
 0x994   : > { %v1761_v56 = vsub.f32 %v1742_v2, %v1759_v19 }
 0x996   : > { %v1763_v20 = vmul.f32 %v1761_v56, %v1761_v56 }
 0x998   : > { %v1765_v21 = vsel %vm976_vm8, %v1763_v20, 0.0 }
 0x999   : > { %1766 = vadd.xlane.f32.xlu2 %v1765_v21 }
 0x9bb   : > { %v1683_v22 = vpop.xlane.xlu2 %1682 }
 0x9bc   : > { %2474 = vrcp.f32 %v1683_v22 }
 0x9c2   : > { %v2475_v23 = vpop.eup %2474 }
 0x9c3   : > { %v1685_v24 = vmul.f32 %v2475_v23, %v2467_v60  ;;  %v1687_v25 = vpop.permute.xlu2 %1686 }
 0x9c4   : > { %1707 = vmatpush.msrb.mxu2 %v1687_v25 }
 0x9c5   : > { %2303 = vmatmul.msk.f32.vlgmr.msrb.gmra.mxu2 %vm1014_vm9, %v1685_v24 }
 0x9e5   : > { %v1505_v26 = vpop.f32.mrf.mxu1 }
 0x9e6   : > { %2295 = vmatmul.msk.f32.vlgmr.msra.gmra.mxu3 %vm1014_vm9, %v1505_v26 }
 0x9e7   : > { %1833 = vmatpush.msra.mxu3 %v1810_v28 }
 0x9e9   : > { %1834 = vmatpush.msra.mxu3 %v1809_v29 }
 0x9eb   : > { %1835 = vmatpush.msra.mxu3 %v1808_v30 }
 0x9ed   : > { %v1618_v27 = vpop.f32.mrf.mxu1  ;;  %1836 = vmatpush.msra.mxu3 %v1807_v31 }
 0x9ee   : > { %2300 = vmatmul.msk.f32.vlgmr.msrb.gmra.mxu3 %vm1014_vm9, %v1618_v27 }
 0xa0c   : > { %v1767_v32 = vpop.xlane.xlu2 %1766 }
 0xa0d   : > { %v1771_v33 = vmul.f32 %v1767_v32, %v3245_v17 }
 0xa0f   : > { %v1773_v34 = vadd.f32 1e-12, %v1771_v33 }
 0xa11   : > { %2476 = vrsqrt.f32 %v1773_v34  ;;  %vm1781_vm12 = vweird.f32 %v1773_v34 }
 0xa17   : > { %v2477_v35 = vpop.eup %2476 }
 0xa18   : > { %v1776_v36 = vmul.f32 %v2477_v35, %v1773_v34  ;;  %vm1782_vm11 = vweird.f32 %v2477_v35 }
 0xa19   : > { %vm1783_vm13 = vmor %vm1781_vm12, %vm1782_vm11 }
 0xa1a   : > { %v1777_v38 = vmul.f32 %v2477_v35, %v1776_v36 }
 0xa1c   : > { %v1778_v39 = vmul.f32 0.5, %v1777_v38 }
 0xa1e   : > { %v1779_v40 = vsub.f32 1.5, %v1778_v39 }
 0xa20   : > { %v1780_v41 = vmul.f32 %v2477_v35, %v1779_v40 }
 0xa22   : > { %v1784_v43 = vsel %vm1783_vm13, %v2477_v35, %v1780_v41 }
 0xa23   : > { %v1795_v44 = vmul.f32 %v1784_v43, %v1761_v56 }
 0xa25   : > { %v1800_v46 = vmul.f32 %v3259_v42, %v1795_v44 }
 0xa27   : > { %v1805_v47 = vadd.f32 %v3266_v45, %v1800_v46 }
 0xa29   : > { %2305 = vmatmul.msk.f32.vlgmr.msra.gmra.mxu3 %vm976_vm8, %v1805_v47 }
 0xa48   : > { %v1709_v48 = vpop.f32.mrf.mxu2 }
 0xa49   : > { %2304 = vmatmul.msk.f32.vlgmr.msrb.gmra.mxu1 %vm1014_vm9, %v1709_v48 }
 0xa69   : > { %v1528_v52 = vpop.f32.mrf.mxu3 }
 0xa6a   : > { %v1552_v10 = vadd.f32 %v3216_v37, %v1528_v52 }
 0xa71   : > { %v1641_v2 = vpop.f32.mrf.mxu3 }
 0xa72   : > { %v1644_v12 = vadd.f32 %v1641_v2, %v1552_v10 }
 0xaac   : > { %v1838_v5 = vpop.f32.mrf.mxu3 }
 0xaad   : > { %v1839_v51 = vadd.f32 %v3285_v4, %v1838_v5 }
 0xaaf   : > { %v1844_v60 = vmul.f32 %v1839_v51, %v1839_v51 }
 0xab1   : > { %v1846_v63 = vmul.f32 %v1844_v60, %v1839_v51 }
 0xab3   : > { %v1848_v62 = vmul.f32 0.044715, %v1846_v63 }
 0xab5   : > { %v1850_v6 = vadd.f32 %v1848_v62, %v1839_v51 }
 0xab7   : > { %v1852_v7 = vmul.f32 0.7978846, %v1850_v6 }
 0xab9   : > { %2478 = vtanh.f32 %v1852_v7 }
 0xabf   : > { %v2479_v53 = vpop.eup %2478 }
 0xac0   : > { %v1856_v9 = vadd.f32 1.0, %v2479_v53 }
 0xac2   : > { %v1858_v61 = vmul.f32 0.5, %v1856_v9 }
 0xac4   : > { %v1860_v11 = vmul.f32 %v1858_v61, %v1839_v51 }
 0xac6   : > { %v1732_v13 = vpop.f32.mrf.mxu1  ;;  %2307 = vmatmul.msk.f32.vlgmr.msra.gmra.mxu0 %vm1874_vm14, %v1860_v11 }
 0xac7   : > { %v1735_v8 = vadd.f32 %v1732_v13, %v1644_v12 }
 0xac9   : > { %v1741_v14 = vadd.f32 %v3234_v0, %v1735_v8 }
 0xacb   : > { %v1743_v15 = vadd.f32 %v1741_v14, %v3108_v57 }
 0xacd   : > { %v1749_v16 = vsel %vm976_vm8, %v1743_v15, 0.0 }
 0xace   : > { %1750 = vadd.xlane.f32.xlu0 %v1749_v16 }
 0xb41   : > { %v1751_v37 = vpop.xlane.xlu0 %1750 }
 0xb42   : > { %v1760_v19 = vmul.f32 %v3245_v17, %v1751_v37 }
 0xb43   : > { %v1898_v56 = vpop.f32.mrf.mxu0 }
 0xb44   : > { %v1762_v20 = vsub.f32 %v1743_v15, %v1760_v19  ;;  %v1899_v21 = vadd.f32 %v3298_v18, %v1898_v56 }
 0xb46   : > { %v1764_v22 = vmul.f32 %v1762_v20, %v1762_v20  ;;  %v1904_v0 = vadd.f32 %v1899_v21, %v1805_v47 }
 0xb48   : > { %v1768_v57 = vsel %vm976_vm8, %v1764_v22, 0.0  ;;  %v1908_v23 = vsel %vm976_vm8, %v1904_v0, 0.0 }
 0xb49   : > { %1769 = vadd.xlane.f32.xlu1 %v1768_v57  ;;  %1909 = vadd.xlane.f32.xlu0 %v1908_v23 }
 0xbbc   : > { %v1770_v24 = vpop.xlane.xlu1 %1769  ;;  %v1910_v25 = vpop.xlane.xlu0 %1909 }
 0xbbd   : > { %v1772_v26 = vmul.f32 %v1770_v24, %v3245_v17  ;;  %v1914_v27 = vmul.f32 %v1910_v25, %v3245_v17 }
 0xbbf   : > { %v1774_v28 = vadd.f32 1e-12, %v1772_v26  ;;  %v1916_v29 = vsub.f32 %v1904_v0, %v1914_v27 }
 0xbc1   : > { %2480 = vrsqrt.f32 %v1774_v28  ;;  %v1918_v30 = vmul.f32 %v1916_v29, %v1916_v29  ;;  %vm1791_vm0 = vweird.f32 %v1774_v28 }
 0xbc3   : > { %v1920_v31 = vsel %vm976_vm8, %v1918_v30, 0.0 }
 0xbc4   : > { %1921 = vadd.xlane.f32.xlu0 %v1920_v31 }
 0xbc7   : > { %v2481_v32 = vpop.eup %2480 }
 0xbc8   : > { %v1786_v33 = vmul.f32 %v2481_v32, %v1774_v28  ;;  %vm1792_vm15 = vweird.f32 %v2481_v32 }
 0xbc9   : > { %vm1793_vm1 = vmor %vm1791_vm0, %vm1792_vm15 }
 0xbca   : > { %v1787_v34 = vmul.f32 %v2481_v32, %v1786_v33 }
 0xbcc   : > { %v1788_v35 = vmul.f32 0.5, %v1787_v34 }
 0xbce   : > { %v1789_v36 = vsub.f32 1.5, %v1788_v35 }
 0xbd0   : > { %v1790_v38 = vmul.f32 %v2481_v32, %v1789_v36 }
 0xbd2   : > { %v1794_v39 = vsel %vm1793_vm1, %v2481_v32, %v1790_v38 }
 0xbd3   : > { %v1796_v40 = vmul.f32 %v1794_v39, %v1762_v20 }
 0xbd5   : > { %v1801_v41 = vmul.f32 %v3259_v42, %v1796_v40  ;;  %v2440_v42 = vld [vmem:[%s3443_s11] ss:$0 sm:$0xff] }
 0xbd7   : > { %v1806_v43 = vadd.f32 %v3266_v45, %v1801_v41 }
 0xbd9   : > { %2306 = vmatmul.msk.f32.gmra.mxu3 %vm976_vm8, %v1806_v43 }
 0xc37   : > { %v1922_v44 = vpop.xlane.xlu0 %1921 }
 0xc38   : > { %v1926_v46 = vmul.f32 %v1922_v44, %v3245_v17 }
 0xc3a   : > { %v1928_v47 = vadd.f32 1e-12, %v1926_v46 }
 0xc3c   : > { %2482 = vrsqrt.f32 %v1928_v47  ;;  %vm1936_vm3 = vweird.f32 %v1928_v47 }
 0xc42   : > { %v2483_v48 = vpop.eup %2482 }
 0xc43   : > { %v1931_v49 = vmul.f32 %v2483_v48, %v1928_v47  ;;  %vm1937_vm2 = vweird.f32 %v2483_v48 }
 0xc44   : > { %vm1938_vm4 = vmor %vm1936_vm3, %vm1937_vm2 }
 0xc45   : > { %v1932_v50 = vmul.f32 %v2483_v48, %v1931_v49 }
 0xc47   : > { %v1933_v52 = vmul.f32 0.5, %v1932_v50 }
 0xc49   : > { %v1934_v54 = vsub.f32 1.5, %v1933_v52 }
 0xc4b   : > { %v1935_v55 = vmul.f32 %v2483_v48, %v1934_v54 }
 0xc4d   : > { %v1939_v45 = vsel %vm1938_vm4, %v2483_v48, %v1935_v55 }
 0xc4e   : > { %v1950_v59 = vmul.f32 %v1939_v45, %v1916_v29 }
 0xc50   : > { %v1955_v1 = vmul.f32 %v2440_v42, %v1950_v59 }
 0xc52   : > { %v1960_v2 = vadd.f32 %v2441_v58, %v1955_v1 }
 0xc54   : > { %1962 = vst.msk [vmem:[#allocation2] sm:$0xff] %vm976_vm8, %v1960_v2 }
 0xc5c   : > { %v1841_v3 = vpop.f32.mrf.mxu3 }
 0xc5d   : > { %v1842_v5 = vadd.f32 %v3285_v4, %v1841_v3 }
 0xc5f   : > { %v1845_v51 = vmul.f32 %v1842_v5, %v1842_v5 }
 0xc61   : > { %v1847_v60 = vmul.f32 %v1845_v51, %v1842_v5 }
 0xc63   : > { %v1849_v63 = vmul.f32 0.044715, %v1847_v60 }
 0xc65   : > { %v1851_v62 = vadd.f32 %v1849_v63, %v1842_v5 }
 0xc67   : > { %v1853_v6 = vmul.f32 0.7978846, %v1851_v62 }
 0xc69   : > { %2484 = vtanh.f32 %v1853_v6 }
 0xc6f   : > { %v2485_v7 = vpop.eup %2484 }
 0xc70   : > { %v1857_v53 = vadd.f32 1.0, %v2485_v7 }
 0xc72   : > { %v1859_v9 = vmul.f32 0.5, %v1857_v53 }
 0xc74   : > { %v1861_v61 = vmul.f32 %v1859_v9, %v1842_v5 }
 0xc76   : > { %2308 = vmatmul.msk.f32.gmra.mxu0 %vm1874_vm14, %v1861_v61 }
 0xcf3   : > { %v1901_v10 = vpop.f32.mrf.mxu0 }
 0xcf4   : > { %v1902_v11 = vadd.f32 %v3298_v18, %v1901_v10 }
 0xcf6   : > { %v1905_v12 = vadd.f32 %v1902_v11, %v1806_v43 }
 0xcf8   : > { %v1911_v13 = vsel %vm976_vm8, %v1905_v12, 0.0 }
 0xcf9   : > { %1912 = vadd.xlane.f32.xlu1 %v1911_v13 }
 0xd6c   : > { %v1913_v4 = vpop.xlane.xlu1 %1912 }
 0xd6d   : > { %v1915_v8 = vmul.f32 %v1913_v4, %v3245_v17 }
 0xd6f   : > { %v1917_v14 = vsub.f32 %v1905_v12, %v1915_v8 }
 0xd71   : > { %v1919_v15 = vmul.f32 %v1917_v14, %v1917_v14 }
 0xd73   : > { %v1923_v16 = vsel %vm976_vm8, %v1919_v15, 0.0 }
 0xd74   : > { %1924 = vadd.xlane.f32.xlu2 %v1923_v16 }
 0xde7   : > { %v1925_v37 = vpop.xlane.xlu2 %1924 }
 0xde8   : > { %v1927_v19 = vmul.f32 %v1925_v37, %v3245_v17 }
 0xdea   : > { %v1929_v56 = vadd.f32 1e-12, %v1927_v19 }
 0xdec   : > { %2486 = vrsqrt.f32 %v1929_v56  ;;  %vm1946_vm6 = vweird.f32 %v1929_v56 }
 0xdf2   : > { %v2487_v20 = vpop.eup %2486 }
 0xdf3   : > { %v1941_v21 = vmul.f32 %v2487_v20, %v1929_v56  ;;  %vm1947_vm5 = vweird.f32 %v2487_v20 }
 0xdf4   : > { %vm1948_vm7 = vmor %vm1946_vm6, %vm1947_vm5 }
 0xdf5   : > { %v1942_v18 = vmul.f32 %v2487_v20, %v1941_v21 }
 0xdf7   : > { %v1943_v22 = vmul.f32 0.5, %v1942_v18 }
 0xdf9   : > { %v1944_v0 = vsub.f32 1.5, %v1943_v22 }
 0xdfb   : > { %v1945_v57 = vmul.f32 %v2487_v20, %v1944_v0 }
 0xdfd   : > { %v1949_v23 = vsel %vm1948_vm7, %v2487_v20, %v1945_v57 }
 0xdfe   : > { %v1951_v24 = vmul.f32 %v1949_v23, %v1917_v14 }
 0xe00   : > { %v1956_v25 = vmul.f32 %v2440_v42, %v1951_v24  ;;  %1967 = sbr.rel (%p2309_p4) target bundleno = 3861 (0xf15), region = 132 }
 0xe02   : > { %v1961_v26 = vadd.f32 %v2441_v58, %v1956_v25 }
 0xe04   : > { %1963 = vst.msk [vmem:[#allocation2 + $0x8] sm:$0xff] %vm976_vm8, %v1961_v26 }
 0xe05   : > { %v1976_v17 = vld [vmem:[%s3445_s24 + $0x18] sm:$0xff]  ;;  %v1975_v27 = vld [vmem:[%s3446_s13 + $0x10] sm:$0xff]  ;;  %v1969_v28 = vrot.slane %v1961_v26, 7  ;;  %v1974_v29 = vld [vmem:[%s3446_s13 + $0x8] sm:$0xff]  ;;  %vm1971_vm9 = vcmask 1040384   ;;  %vm2036_vm10 = vcmask 9216  }
 0xe06   : > { %1996 = vmatpush.msra.mxu0 %v1976_v17  ;;  %v1973_v30 = vld [vmem:[%s3446_s13] sm:$0xff]  ;;  %v2008_v32 = vld [vmem:[%s3447_s26 + $0x18] sm:$0xff]  ;;  %v2007_v33 = vld [vmem:[%s3447_s26 + $0x10] sm:$0xff] }
 0xe07   : > { %v1972_v31 = vsel %vm1971_vm9, %v1960_v2, %v1969_v28  ;;  %2028 = vmatpush.msra.mxu1 %v2008_v32  ;;  %v2006_v34 = vld [vmem:[%s3447_s26 + $0x8] sm:$0xff]  ;;  %v2005_v35 = vld [vmem:[%s3447_s26] sm:$0xff] }
 0xe08   : > { %1997 = vmatpush.msra.mxu0 %v1975_v27  ;;  %v2488_v36 = vld [vmem:[%s3448_s29] ss:$0 sm:$0xff] }
 0xe09   : > { %2029 = vmatpush.msra.mxu1 %v2007_v33  ;;  %v2489_v41 = vld [vmem:[%s3449_s28] ss:$0 sm:$0xff] }
 0xe0a   : > { %1998 = vmatpush.msra.mxu0 %v1974_v29 }
 0xe0b   : > { %2030 = vmatpush.msra.mxu1 %v2006_v34 }
 0xe0c   : > { %1999 = vmatpush.msra.mxu0 %v1973_v30 }
 0xe0d   : > { %2310 = vmatmul.msk.f32.vlgmr.msra.gmra.mxu0 %vm976_vm8, %v1972_v31  ;;  %2031 = vmatpush.msra.mxu1 %v2005_v35 }
 0xe8a   : > { %v2001_v38 = vpop.f32.mrf.mxu0 }
 0xe8b   : > { %v2002_v39 = vadd.f32 %v2488_v36, %v2001_v38 }
 0xe8d   : > { %2490 = vtanh.f32 %v2002_v39 }
 0xe93   : > { %v2491_v40 = vpop.eup %2490 }
 0xe94   : > { %2311 = vmatmul.msk.f32.vlgmr.msra.gmra.mxu1 %vm976_vm8, %v2491_v40 }
 0xf11   : > { %v2033_v43 = vpop.f32.mrf.mxu1 }
 0xf12   : > { %v2034_v44 = vadd.f32 %v2489_v41, %v2033_v43 }
 0xf14   : > { %2037 = vst.msk [vmem:[#allocation14] sm:$0x3] %vm2036_vm10, %v2034_v44 }
 0xf15 PF: > { %p2373_p5 = scmp.eq.s32.totalorder %s2895_s2, 1  ;;  %s2770_s0 = smov [#allocation14]  }
 0xf16   : > { %s2044_s24 = sshll.u32 %s2770_s0, 4  ;;  %s3450_s23 = sld [smem:[#allocation38_spill]]  ;;  %s2045_s24 = int_to_ptr.vmem [resolvable:$true] %s2044_s24 }
 0xf1c   : > { %s2046_s15 = sshll.u32 %s3450_s23, 4  ;;  %s2047_s15 = int_to_ptr.hbm [resolvable:$true] %s2046_s15 }
 0xf1d   : > { %2343 = dma.vmem_to_hbm [thread:$0]  (%p2373_p5), %s2045_s24, 32, %s2047_s15, [#allocation5]  }
 0xf1e   : > { %2733 = dma.done.wait (%p2373_p5), [#allocation5], 32  }
 0xf1f   : > { %2735 = vsyncadd (%p2373_p5), [#allocation5], 4294967264 }
 0xf20 PF: > { %s3451_s24 = sld [smem:[#allocation21_spill]]  ;;  %s3454_s1 = smov %s2742_s22 }
 0xf21   : > { %s3452_s20 = sld [smem:[#allocation20_spill]] }
 0xf22   : > { %s3453_s23 = sld [smem:[#allocation22_spill]] }
 0xf26   : > { %p36_p6 = scmp.ge.s32.totalorder %s3451_s24, 4  }
 0xf27   : > { %s3455_s22 = smov %s3452_s20 }
 0xf28   :  { %38 = sbr.rel (!%p36_p6) target bundleno = 25 (0x19), region = 209 }
 0xf2d   :  { %2060 = vsyncpa [#allocation4], 1 }
 0xf2e   :  { %2062 = vsyncpa [#allocation4 + $0x1], 1 }
 0xf2f   :  { %2063 = vsyncpa [#allocation7], 1 }
 0xf30   :  { %2064 = vsyncpa [#allocation10], 1 }
 0xf31   :  { %2066 = vsyncpa [#allocation10 + $0x1], 1 }
 0xf32   :  { %2067 = vsyncpa [#allocation13], 1 }
 0xf33   :  { %2069 = vsyncpa [#allocation13 + $0x1], 1 }
 0xf34   :  { %2070 = vsyncpa [#allocation5], 1 }
 0xf35   :  { %2072 = vsyncpa [#allocation5 + $0x1], 1 }

</bundles_post_ra>
